<compile_context>
chip_gen: v6e
topology: v6e:2x2x1
jax: 0.10.0
libtpu: 0.0.40
codegen_flags: <defaults>
</compile_context>

<pallas_src>
import jax
import jax.numpy as jnp
from jax.experimental import pallas as pl
from jax.experimental.pallas import tpu as pltpu


def _solver_kernel(dt_ref,                                   # SMEM prefetch: (T,) f32, dt[0] unused
                   y0_ref, w1_ref, b1_ref, w2_ref, b2_ref,   # VMEM inputs
                   out_ref):                                 # VMEM output (B, T*D)
    B, D = y0_ref.shape
    H = w1_ref.shape[1]
    T = out_ref.shape[1] // D

    # Hoist weight loads and bias broadcasts: ode_func is called 4x per step.
    w1 = w1_ref[...]
    w2 = w2_ref[...]
    b1 = jnp.broadcast_to(b1_ref[...], (B, H))
    b2 = jnp.broadcast_to(b2_ref[...], (B, D))

    def ode_func(y):
        # dy/dt = tanh(y @ W1 + b1) @ W2 + b2   (time-invariant neural ODE)
        h = jnp.tanh(jnp.dot(y, w1, preferred_element_type=jnp.float32) + b1)
        return jnp.dot(h, w2, preferred_element_type=jnp.float32) + b2

    # pred_y[0] = first_point (odeint semantics).
    y = y0_ref[...].astype(jnp.float32)
    out_ref[:, 0:D] = y.astype(out_ref.dtype)

    # T is a static Python int -> fully unrolled loop, all slice offsets static.
    for t in range(1, T):
        dt = dt_ref[t]                      # scalar SMEM read
        k1 = ode_func(y)
        k2 = ode_func(y + (0.5 * dt) * k1)
        k3 = ode_func(y + (0.5 * dt) * k2)
        k4 = ode_func(y + dt * k3)
        y = y + (dt / 6.0) * (k1 + 2.0 * k2 + 2.0 * k3 + k4)
        out_ref[:, t * D:(t + 1) * D] = y.astype(out_ref.dtype)


def diffeq_solver(first_point, time_steps_to_predict, params, backwards=False):
    """Pallas equivalent of DiffeqSolver.forward.

    first_point:            [B, D] float32
    time_steps_to_predict:  [T]    float32
    params: dict with 'w1' [D,H], 'b1' [1,H], 'w2' [H,D], 'b2' [1,D]
    returns pred_y:         [T, B, D] float32   (pred_y[0] == first_point)
    """
    B, D = first_point.shape
    H = params["w1"].shape[1]
    T = int(time_steps_to_predict.shape[0])

    ts = time_steps_to_predict.astype(jnp.float32)
    # dt[0] = 0 (unused), dt[t] = ts[t] - ts[t-1]; backwards folds the sign in.
    dt = ts - jnp.concatenate([ts[:1], ts[:-1]])
    if backwards:
        dt = -dt

    grid_spec = pltpu.PrefetchScalarGridSpec(
        num_scalar_prefetch=1,
        grid=(1,),                                        # single grid step
        in_specs=[
            pl.BlockSpec((B, D), lambda i, dt: (0, 0)),   # first_point
            pl.BlockSpec((D, H), lambda i, dt: (0, 0)),   # w1
            pl.BlockSpec((1, H), lambda i, dt: (0, 0)),   # b1
            pl.BlockSpec((H, D), lambda i, dt: (0, 0)),   # w2
            pl.BlockSpec((1, D), lambda i, dt: (0, 0)),   # b2
        ],
        out_specs=pl.BlockSpec((B, T * D), lambda i, dt: (0, 0)),
    )

    out = pl.pallas_call(
        _solver_kernel,
        out_shape=jax.ShapeDtypeStruct((B, T * D), jnp.float32),
        grid_spec=grid_spec,
        compiler_params=pltpu.CompilerParams(
            dimension_semantics=("arbitrary",)),
    )(dt, first_point, params["w1"], params["b1"], params["w2"], params["b2"])

    # (B, T*D) lane-dense slab -> (T, B, D) torchdiffeq layout.
    return out.reshape(B, T, D).transpose(1, 0, 2)


def _diffeq_solver_ref(first_point, time_steps, params, backwards=False):
    """Pure-JAX RK4 reference for correctness checking."""
    ts = time_steps.astype(jnp.float32)
    if backwards:
        ts = -ts
    hi = jax.lax.Precision.HIGHEST

    def f(y):
        h = jnp.tanh(jnp.dot(y, params["w1"], precision=hi) + params["b1"])
        return jnp.dot(h, params["w2"], precision=hi) + params["b2"]

    ys = [first_point]
    y = first_point
    for t in range(1, ts.shape[0]):
        dt = ts[t] - ts[t - 1]
        k1 = f(y)
        k2 = f(y + 0.5 * dt * k1)
        k3 = f(y + 0.5 * dt * k2)
        k4 = f(y + dt * k3)
        y = y + (dt / 6.0) * (k1 + 2.0 * k2 + 2.0 * k3 + k4)
        ys.append(y)
    return jnp.stack(ys, axis=0)


def _init_ode_func_params(key, latent_dim, hidden_dim):
    k1, k2 = jax.random.split(key)
    scale1 = 1.0 / jnp.sqrt(latent_dim)
    scale2 = 1.0 / jnp.sqrt(hidden_dim)
    return {
        "w1": (jax.random.normal(k1, (latent_dim, hidden_dim), jnp.float32)
               * scale1),
        "b1": jnp.zeros((1, hidden_dim), jnp.float32),
        "w2": (jax.random.normal(k2, (hidden_dim, latent_dim), jnp.float32)
               * scale2),
        "b2": jnp.zeros((1, latent_dim), jnp.float32),
    }


if __name__ == "__main__":
    key = jax.random.PRNGKey(0)
    k_y0, k_params = jax.random.split(key)

    B = 8        # batch (trajectories)
    D = 32       # latent dim
    H = 64       # ode_func hidden dim
    T = 8        # number of time steps to predict   (B*D = 256 lanes)

    first_point = jax.random.normal(k_y0, (B, D), jnp.float32)
    time_steps = jnp.linspace(0.0, 1.0, T, dtype=jnp.float32)
    params = _init_ode_func_params(k_params, D, H)

    pred_y = diffeq_solver(first_point, time_steps, params)
    pred_y = jax.block_until_ready(pred_y)

    # Mirror the module's assertion: mean(pred_y[0] - first_point) < 1e-3
    assert float(jnp.mean(pred_y[0] - first_point)) < 1e-3
    assert pred_y.shape == (T, B, D)
    assert bool(jnp.all(jnp.isfinite(pred_y)))

    # Compare against a pure-JAX RK4 reference (loose tol to absorb MXU
    # accumulation-order differences).
    ref_y = _diffeq_solver_ref(first_point, time_steps, params)
    max_err = float(jnp.max(jnp.abs(pred_y - ref_y)))
    assert max_err < 5e-2, f"max abs error vs reference: {max_err}"

    print("KERNEL_OK")
</pallas_src>

<mosaic_0001>
module attributes {stable_mosaic.version = 11 : i64} {
  func.func @_solver_kernel(%arg0: i32, %arg1: memref<8xf32, #tpu.memory_space<smem>>, %arg2: memref<8x32xf32, #tpu.memory_space<vmem>>, %arg3: memref<32x64xf32, #tpu.memory_space<vmem>>, %arg4: memref<1x64xf32, #tpu.memory_space<vmem>>, %arg5: memref<64x32xf32, #tpu.memory_space<vmem>>, %arg6: memref<1x32xf32, #tpu.memory_space<vmem>>, %arg7: memref<8x256xf32, #tpu.memory_space<vmem>>) attributes {dimension_semantics = [#tpu.dimension_semantics<arbitrary>], iteration_bounds = array<i64: 1>, scalar_prefetch = 1 : i64, scratch_operands = 0 : i64, tpu.core_type = #tpu.core_type<tc>, window_params = [{pipeline_mode = #tpu.pipeline_mode<synchronous>, transform_indices = @transform_0, window_bounds = array<i64: 8, 32>}, {pipeline_mode = #tpu.pipeline_mode<synchronous>, transform_indices = @transform_1, window_bounds = array<i64: 32, 64>}, {pipeline_mode = #tpu.pipeline_mode<synchronous>, transform_indices = @transform_2, window_bounds = array<i64: 1, 64>}, {pipeline_mode = #tpu.pipeline_mode<synchronous>, transform_indices = @transform_3, window_bounds = array<i64: 64, 32>}, {pipeline_mode = #tpu.pipeline_mode<synchronous>, transform_indices = @transform_4, window_bounds = array<i64: 1, 32>}, {pipeline_mode = #tpu.pipeline_mode<synchronous>, transform_indices = @transform_5, window_bounds = array<i64: 8, 256>}]} {
    %c0 = arith.constant 0 : index
    %c0_0 = arith.constant 0 : index
    %0 = vector.load %arg3[%c0, %c0_0] : memref<32x64xf32, #tpu.memory_space<vmem>>, vector<32x64xf32>
    %c0_1 = arith.constant 0 : index
    %c0_2 = arith.constant 0 : index
    %1 = vector.load %arg5[%c0_1, %c0_2] : memref<64x32xf32, #tpu.memory_space<vmem>>, vector<64x32xf32>
    %c0_3 = arith.constant 0 : index
    %c0_4 = arith.constant 0 : index
    %2 = vector.load %arg4[%c0_3, %c0_4] : memref<1x64xf32, #tpu.memory_space<vmem>>, vector<1x64xf32>
    %3 = vector.shape_cast %2 : vector<1x64xf32> to vector<1x64xf32>
    %4 = vector.broadcast %3 : vector<1x64xf32> to vector<8x64xf32>
    %c0_5 = arith.constant 0 : index
    %c0_6 = arith.constant 0 : index
    %5 = vector.load %arg6[%c0_5, %c0_6] : memref<1x32xf32, #tpu.memory_space<vmem>>, vector<1x32xf32>
    %6 = vector.shape_cast %5 : vector<1x32xf32> to vector<1x32xf32>
    %7 = vector.broadcast %6 : vector<1x32xf32> to vector<8x32xf32>
    %c0_7 = arith.constant 0 : index
    %c0_8 = arith.constant 0 : index
    %8 = vector.load %arg2[%c0_7, %c0_8] : memref<8x32xf32, #tpu.memory_space<vmem>>, vector<8x32xf32>
    %c0_9 = arith.constant 0 : index
    %c0_10 = arith.constant 0 : index
    %9 = vector.load %arg7[%c0_9, %c0_10] : memref<8x256xf32, #tpu.memory_space<vmem>>, vector<8x32xf32>
    tpu.vector_store %arg7[%c0_9, %c0_10], %8 {strides = array<i32>} : memref<8x256xf32, #tpu.memory_space<vmem>>, vector<8x32xf32>,
    %c1 = arith.constant 1 : index
    %10 = memref.load %arg1[%c1] : memref<8xf32, #tpu.memory_space<smem>>
    %cst = arith.constant dense<0.000000e+00> : vector<8x64xf32>
    %11 = tpu.matmul %8, %0, %cst {dimension_numbers = #tpu.dot_dimension_numbers<[1], [0], [0], [1], [0, 0, 1, 1], [], []>} : vector<8x32xf32>, vector<32x64xf32>, vector<8x64xf32> -> vector<8x64xf32>
    %12 = arith.addf %11, %4 : vector<8x64xf32>
    %13 = math.tanh %12 : vector<8x64xf32>
    %cst_11 = arith.constant dense<0.000000e+00> : vector<8x32xf32>
    %14 = tpu.matmul %13, %1, %cst_11 {dimension_numbers = #tpu.dot_dimension_numbers<[1], [0], [0], [1], [0, 0, 1, 1], [], []>} : vector<8x64xf32>, vector<64x32xf32>, vector<8x32xf32> -> vector<8x32xf32>
    %15 = arith.addf %14, %7 : vector<8x32xf32>
    %cst_12 = arith.constant 5.000000e-01 : f32
    %16 = arith.mulf %cst_12, %10 : f32
    %17 = vector.broadcast %16 : f32 to vector<8x32xf32>
    %18 = arith.mulf %17, %15 : vector<8x32xf32>
    %19 = arith.addf %8, %18 : vector<8x32xf32>
    %cst_13 = arith.constant dense<0.000000e+00> : vector<8x64xf32>
    %20 = tpu.matmul %19, %0, %cst_13 {dimension_numbers = #tpu.dot_dimension_numbers<[1], [0], [0], [1], [0, 0, 1, 1], [], []>} : vector<8x32xf32>, vector<32x64xf32>, vector<8x64xf32> -> vector<8x64xf32>
    %21 = arith.addf %20, %4 : vector<8x64xf32>
    %22 = math.tanh %21 : vector<8x64xf32>
    %cst_14 = arith.constant dense<0.000000e+00> : vector<8x32xf32>
    %23 = tpu.matmul %22, %1, %cst_14 {dimension_numbers = #tpu.dot_dimension_numbers<[1], [0], [0], [1], [0, 0, 1, 1], [], []>} : vector<8x64xf32>, vector<64x32xf32>, vector<8x32xf32> -> vector<8x32xf32>
    %24 = arith.addf %23, %7 : vector<8x32xf32>
    %cst_15 = arith.constant 5.000000e-01 : f32
    %25 = arith.mulf %cst_15, %10 : f32
    %26 = vector.broadcast %25 : f32 to vector<8x32xf32>
    %27 = arith.mulf %26, %24 : vector<8x32xf32>
    %28 = arith.addf %8, %27 : vector<8x32xf32>
    %cst_16 = arith.constant dense<0.000000e+00> : vector<8x64xf32>
    %29 = tpu.matmul %28, %0, %cst_16 {dimension_numbers = #tpu.dot_dimension_numbers<[1], [0], [0], [1], [0, 0, 1, 1], [], []>} : vector<8x32xf32>, vector<32x64xf32>, vector<8x64xf32> -> vector<8x64xf32>
    %30 = arith.addf %29, %4 : vector<8x64xf32>
    %31 = math.tanh %30 : vector<8x64xf32>
    %cst_17 = arith.constant dense<0.000000e+00> : vector<8x32xf32>
    %32 = tpu.matmul %31, %1, %cst_17 {dimension_numbers = #tpu.dot_dimension_numbers<[1], [0], [0], [1], [0, 0, 1, 1], [], []>} : vector<8x64xf32>, vector<64x32xf32>, vector<8x32xf32> -> vector<8x32xf32>
    %33 = arith.addf %32, %7 : vector<8x32xf32>
    %34 = vector.broadcast %10 : f32 to vector<8x32xf32>
    %35 = arith.mulf %34, %33 : vector<8x32xf32>
    %36 = arith.addf %8, %35 : vector<8x32xf32>
    %cst_18 = arith.constant dense<0.000000e+00> : vector<8x64xf32>
    %37 = tpu.matmul %36, %0, %cst_18 {dimension_numbers = #tpu.dot_dimension_numbers<[1], [0], [0], [1], [0, 0, 1, 1], [], []>} : vector<8x32xf32>, vector<32x64xf32>, vector<8x64xf32> -> vector<8x64xf32>
    %38 = arith.addf %37, %4 : vector<8x64xf32>
    %39 = math.tanh %38 : vector<8x64xf32>
    %cst_19 = arith.constant dense<0.000000e+00> : vector<8x32xf32>
    %40 = tpu.matmul %39, %1, %cst_19 {dimension_numbers = #tpu.dot_dimension_numbers<[1], [0], [0], [1], [0, 0, 1, 1], [], []>} : vector<8x64xf32>, vector<64x32xf32>, vector<8x32xf32> -> vector<8x32xf32>
    %41 = arith.addf %40, %7 : vector<8x32xf32>
    %cst_20 = arith.constant 6.000000e+00 : f32
    %42 = arith.divf %10, %cst_20 : f32
    %cst_21 = arith.constant 2.000000e+00 : f32
    %43 = vector.broadcast %cst_21 : f32 to vector<8x32xf32>
    %44 = arith.mulf %43, %24 : vector<8x32xf32>
    %45 = arith.addf %15, %44 : vector<8x32xf32>
    %cst_22 = arith.constant 2.000000e+00 : f32
    %46 = vector.broadcast %cst_22 : f32 to vector<8x32xf32>
    %47 = arith.mulf %46, %33 : vector<8x32xf32>
    %48 = arith.addf %45, %47 : vector<8x32xf32>
    %49 = arith.addf %48, %41 : vector<8x32xf32>
    %50 = vector.broadcast %42 : f32 to vector<8x32xf32>
    %51 = arith.mulf %50, %49 : vector<8x32xf32>
    %52 = arith.addf %8, %51 : vector<8x32xf32>
    %c0_23 = arith.constant 0 : index
    %c32 = arith.constant 32 : index
    %53 = vector.load %arg7[%c0_23, %c32] : memref<8x256xf32, #tpu.memory_space<vmem>>, vector<8x32xf32>
    tpu.vector_store %arg7[%c0_23, %c32], %52 {strides = array<i32>} : memref<8x256xf32, #tpu.memory_space<vmem>>, vector<8x32xf32>,
    %c2 = arith.constant 2 : index
    %54 = memref.load %arg1[%c2] : memref<8xf32, #tpu.memory_space<smem>>
    %cst_24 = arith.constant dense<0.000000e+00> : vector<8x64xf32>
    %55 = tpu.matmul %52, %0, %cst_24 {dimension_numbers = #tpu.dot_dimension_numbers<[1], [0], [0], [1], [0, 0, 1, 1], [], []>} : vector<8x32xf32>, vector<32x64xf32>, vector<8x64xf32> -> vector<8x64xf32>
    %56 = arith.addf %55, %4 : vector<8x64xf32>
    %57 = math.tanh %56 : vector<8x64xf32>
    %cst_25 = arith.constant dense<0.000000e+00> : vector<8x32xf32>
    %58 = tpu.matmul %57, %1, %cst_25 {dimension_numbers = #tpu.dot_dimension_numbers<[1], [0], [0], [1], [0, 0, 1, 1], [], []>} : vector<8x64xf32>, vector<64x32xf32>, vector<8x32xf32> -> vector<8x32xf32>
    %59 = arith.addf %58, %7 : vector<8x32xf32>
    %cst_26 = arith.constant 5.000000e-01 : f32
    %60 = arith.mulf %cst_26, %54 : f32
    %61 = vector.broadcast %60 : f32 to vector<8x32xf32>
    %62 = arith.mulf %61, %59 : vector<8x32xf32>
    %63 = arith.addf %52, %62 : vector<8x32xf32>
    %cst_27 = arith.constant dense<0.000000e+00> : vector<8x64xf32>
    %64 = tpu.matmul %63, %0, %cst_27 {dimension_numbers = #tpu.dot_dimension_numbers<[1], [0], [0], [1], [0, 0, 1, 1], [], []>} : vector<8x32xf32>, vector<32x64xf32>, vector<8x64xf32> -> vector<8x64xf32>
    %65 = arith.addf %64, %4 : vector<8x64xf32>
    %66 = math.tanh %65 : vector<8x64xf32>
    %cst_28 = arith.constant dense<0.000000e+00> : vector<8x32xf32>
    %67 = tpu.matmul %66, %1, %cst_28 {dimension_numbers = #tpu.dot_dimension_numbers<[1], [0], [0], [1], [0, 0, 1, 1], [], []>} : vector<8x64xf32>, vector<64x32xf32>, vector<8x32xf32> -> vector<8x32xf32>
    %68 = arith.addf %67, %7 : vector<8x32xf32>
    %cst_29 = arith.constant 5.000000e-01 : f32
    %69 = arith.mulf %cst_29, %54 : f32
    %70 = vector.broadcast %69 : f32 to vector<8x32xf32>
    %71 = arith.mulf %70, %68 : vector<8x32xf32>
    %72 = arith.addf %52, %71 : vector<8x32xf32>
    %cst_30 = arith.constant dense<0.000000e+00> : vector<8x64xf32>
    %73 = tpu.matmul %72, %0, %cst_30 {dimension_numbers = #tpu.dot_dimension_numbers<[1], [0], [0], [1], [0, 0, 1, 1], [], []>} : vector<8x32xf32>, vector<32x64xf32>, vector<8x64xf32> -> vector<8x64xf32>
    %74 = arith.addf %73, %4 : vector<8x64xf32>
    %75 = math.tanh %74 : vector<8x64xf32>
    %cst_31 = arith.constant dense<0.000000e+00> : vector<8x32xf32>
    %76 = tpu.matmul %75, %1, %cst_31 {dimension_numbers = #tpu.dot_dimension_numbers<[1], [0], [0], [1], [0, 0, 1, 1], [], []>} : vector<8x64xf32>, vector<64x32xf32>, vector<8x32xf32> -> vector<8x32xf32>
    %77 = arith.addf %76, %7 : vector<8x32xf32>
    %78 = vector.broadcast %54 : f32 to vector<8x32xf32>
    %79 = arith.mulf %78, %77 : vector<8x32xf32>
    %80 = arith.addf %52, %79 : vector<8x32xf32>
    %cst_32 = arith.constant dense<0.000000e+00> : vector<8x64xf32>
    %81 = tpu.matmul %80, %0, %cst_32 {dimension_numbers = #tpu.dot_dimension_numbers<[1], [0], [0], [1], [0, 0, 1, 1], [], []>} : vector<8x32xf32>, vector<32x64xf32>, vector<8x64xf32> -> vector<8x64xf32>
    %82 = arith.addf %81, %4 : vector<8x64xf32>
    %83 = math.tanh %82 : vector<8x64xf32>
    %cst_33 = arith.constant dense<0.000000e+00> : vector<8x32xf32>
    %84 = tpu.matmul %83, %1, %cst_33 {dimension_numbers = #tpu.dot_dimension_numbers<[1], [0], [0], [1], [0, 0, 1, 1], [], []>} : vector<8x64xf32>, vector<64x32xf32>, vector<8x32xf32> -> vector<8x32xf32>
    %85 = arith.addf %84, %7 : vector<8x32xf32>
    %cst_34 = arith.constant 6.000000e+00 : f32
    %86 = arith.divf %54, %cst_34 : f32
    %cst_35 = arith.constant 2.000000e+00 : f32
    %87 = vector.broadcast %cst_35 : f32 to vector<8x32xf32>
    %88 = arith.mulf %87, %68 : vector<8x32xf32>
    %89 = arith.addf %59, %88 : vector<8x32xf32>
    %cst_36 = arith.constant 2.000000e+00 : f32
    %90 = vector.broadcast %cst_36 : f32 to vector<8x32xf32>
    %91 = arith.mulf %90, %77 : vector<8x32xf32>
    %92 = arith.addf %89, %91 : vector<8x32xf32>
    %93 = arith.addf %92, %85 : vector<8x32xf32>
    %94 = vector.broadcast %86 : f32 to vector<8x32xf32>
    %95 = arith.mulf %94, %93 : vector<8x32xf32>
    %96 = arith.addf %52, %95 : vector<8x32xf32>
    %c0_37 = arith.constant 0 : index
    %c64 = arith.constant 64 : index
    %97 = vector.load %arg7[%c0_37, %c64] : memref<8x256xf32, #tpu.memory_space<vmem>>, vector<8x32xf32>
    tpu.vector_store %arg7[%c0_37, %c64], %96 {strides = array<i32>} : memref<8x256xf32, #tpu.memory_space<vmem>>, vector<8x32xf32>,
    %c3 = arith.constant 3 : index
    %98 = memref.load %arg1[%c3] : memref<8xf32, #tpu.memory_space<smem>>
    %cst_38 = arith.constant dense<0.000000e+00> : vector<8x64xf32>
    %99 = tpu.matmul %96, %0, %cst_38 {dimension_numbers = #tpu.dot_dimension_numbers<[1], [0], [0], [1], [0, 0, 1, 1], [], []>} : vector<8x32xf32>, vector<32x64xf32>, vector<8x64xf32> -> vector<8x64xf32>
    %100 = arith.addf %99, %4 : vector<8x64xf32>
    %101 = math.tanh %100 : vector<8x64xf32>
    %cst_39 = arith.constant dense<0.000000e+00> : vector<8x32xf32>
    %102 = tpu.matmul %101, %1, %cst_39 {dimension_numbers = #tpu.dot_dimension_numbers<[1], [0], [0], [1], [0, 0, 1, 1], [], []>} : vector<8x64xf32>, vector<64x32xf32>, vector<8x32xf32> -> vector<8x32xf32>
    %103 = arith.addf %102, %7 : vector<8x32xf32>
    %cst_40 = arith.constant 5.000000e-01 : f32
    %104 = arith.mulf %cst_40, %98 : f32
    %105 = vector.broadcast %104 : f32 to vector<8x32xf32>
    %106 = arith.mulf %105, %103 : vector<8x32xf32>
    %107 = arith.addf %96, %106 : vector<8x32xf32>
    %cst_41 = arith.constant dense<0.000000e+00> : vector<8x64xf32>
    %108 = tpu.matmul %107, %0, %cst_41 {dimension_numbers = #tpu.dot_dimension_numbers<[1], [0], [0], [1], [0, 0, 1, 1], [], []>} : vector<8x32xf32>, vector<32x64xf32>, vector<8x64xf32> -> vector<8x64xf32>
    %109 = arith.addf %108, %4 : vector<8x64xf32>
    %110 = math.tanh %109 : vector<8x64xf32>
    %cst_42 = arith.constant dense<0.000000e+00> : vector<8x32xf32>
    %111 = tpu.matmul %110, %1, %cst_42 {dimension_numbers = #tpu.dot_dimension_numbers<[1], [0], [0], [1], [0, 0, 1, 1], [], []>} : vector<8x64xf32>, vector<64x32xf32>, vector<8x32xf32> -> vector<8x32xf32>
    %112 = arith.addf %111, %7 : vector<8x32xf32>
    %cst_43 = arith.constant 5.000000e-01 : f32
    %113 = arith.mulf %cst_43, %98 : f32
    %114 = vector.broadcast %113 : f32 to vector<8x32xf32>
    %115 = arith.mulf %114, %112 : vector<8x32xf32>
    %116 = arith.addf %96, %115 : vector<8x32xf32>
    %cst_44 = arith.constant dense<0.000000e+00> : vector<8x64xf32>
    %117 = tpu.matmul %116, %0, %cst_44 {dimension_numbers = #tpu.dot_dimension_numbers<[1], [0], [0], [1], [0, 0, 1, 1], [], []>} : vector<8x32xf32>, vector<32x64xf32>, vector<8x64xf32> -> vector<8x64xf32>
    %118 = arith.addf %117, %4 : vector<8x64xf32>
    %119 = math.tanh %118 : vector<8x64xf32>
    %cst_45 = arith.constant dense<0.000000e+00> : vector<8x32xf32>
    %120 = tpu.matmul %119, %1, %cst_45 {dimension_numbers = #tpu.dot_dimension_numbers<[1], [0], [0], [1], [0, 0, 1, 1], [], []>} : vector<8x64xf32>, vector<64x32xf32>, vector<8x32xf32> -> vector<8x32xf32>
    %121 = arith.addf %120, %7 : vector<8x32xf32>
    %122 = vector.broadcast %98 : f32 to vector<8x32xf32>
    %123 = arith.mulf %122, %121 : vector<8x32xf32>
    %124 = arith.addf %96, %123 : vector<8x32xf32>
    %cst_46 = arith.constant dense<0.000000e+00> : vector<8x64xf32>
    %125 = tpu.matmul %124, %0, %cst_46 {dimension_numbers = #tpu.dot_dimension_numbers<[1], [0], [0], [1], [0, 0, 1, 1], [], []>} : vector<8x32xf32>, vector<32x64xf32>, vector<8x64xf32> -> vector<8x64xf32>
    %126 = arith.addf %125, %4 : vector<8x64xf32>
    %127 = math.tanh %126 : vector<8x64xf32>
    %cst_47 = arith.constant dense<0.000000e+00> : vector<8x32xf32>
    %128 = tpu.matmul %127, %1, %cst_47 {dimension_numbers = #tpu.dot_dimension_numbers<[1], [0], [0], [1], [0, 0, 1, 1], [], []>} : vector<8x64xf32>, vector<64x32xf32>, vector<8x32xf32> -> vector<8x32xf32>
    %129 = arith.addf %128, %7 : vector<8x32xf32>
    %cst_48 = arith.constant 6.000000e+00 : f32
    %130 = arith.divf %98, %cst_48 : f32
    %cst_49 = arith.constant 2.000000e+00 : f32
    %131 = vector.broadcast %cst_49 : f32 to vector<8x32xf32>
    %132 = arith.mulf %131, %112 : vector<8x32xf32>
    %133 = arith.addf %103, %132 : vector<8x32xf32>
    %cst_50 = arith.constant 2.000000e+00 : f32
    %134 = vector.broadcast %cst_50 : f32 to vector<8x32xf32>
    %135 = arith.mulf %134, %121 : vector<8x32xf32>
    %136 = arith.addf %133, %135 : vector<8x32xf32>
    %137 = arith.addf %136, %129 : vector<8x32xf32>
    %138 = vector.broadcast %130 : f32 to vector<8x32xf32>
    %139 = arith.mulf %138, %137 : vector<8x32xf32>
    %140 = arith.addf %96, %139 : vector<8x32xf32>
    %c0_51 = arith.constant 0 : index
    %c96 = arith.constant 96 : index
    %141 = vector.load %arg7[%c0_51, %c96] : memref<8x256xf32, #tpu.memory_space<vmem>>, vector<8x32xf32>
    tpu.vector_store %arg7[%c0_51, %c96], %140 {strides = array<i32>} : memref<8x256xf32, #tpu.memory_space<vmem>>, vector<8x32xf32>,
    %c4 = arith.constant 4 : index
    %142 = memref.load %arg1[%c4] : memref<8xf32, #tpu.memory_space<smem>>
    %cst_52 = arith.constant dense<0.000000e+00> : vector<8x64xf32>
    %143 = tpu.matmul %140, %0, %cst_52 {dimension_numbers = #tpu.dot_dimension_numbers<[1], [0], [0], [1], [0, 0, 1, 1], [], []>} : vector<8x32xf32>, vector<32x64xf32>, vector<8x64xf32> -> vector<8x64xf32>
    %144 = arith.addf %143, %4 : vector<8x64xf32>
    %145 = math.tanh %144 : vector<8x64xf32>
    %cst_53 = arith.constant dense<0.000000e+00> : vector<8x32xf32>
    %146 = tpu.matmul %145, %1, %cst_53 {dimension_numbers = #tpu.dot_dimension_numbers<[1], [0], [0], [1], [0, 0, 1, 1], [], []>} : vector<8x64xf32>, vector<64x32xf32>, vector<8x32xf32> -> vector<8x32xf32>
    %147 = arith.addf %146, %7 : vector<8x32xf32>
    %cst_54 = arith.constant 5.000000e-01 : f32
    %148 = arith.mulf %cst_54, %142 : f32
    %149 = vector.broadcast %148 : f32 to vector<8x32xf32>
    %150 = arith.mulf %149, %147 : vector<8x32xf32>
    %151 = arith.addf %140, %150 : vector<8x32xf32>
    %cst_55 = arith.constant dense<0.000000e+00> : vector<8x64xf32>
    %152 = tpu.matmul %151, %0, %cst_55 {dimension_numbers = #tpu.dot_dimension_numbers<[1], [0], [0], [1], [0, 0, 1, 1], [], []>} : vector<8x32xf32>, vector<32x64xf32>, vector<8x64xf32> -> vector<8x64xf32>
    %153 = arith.addf %152, %4 : vector<8x64xf32>
    %154 = math.tanh %153 : vector<8x64xf32>
    %cst_56 = arith.constant dense<0.000000e+00> : vector<8x32xf32>
    %155 = tpu.matmul %154, %1, %cst_56 {dimension_numbers = #tpu.dot_dimension_numbers<[1], [0], [0], [1], [0, 0, 1, 1], [], []>} : vector<8x64xf32>, vector<64x32xf32>, vector<8x32xf32> -> vector<8x32xf32>
    %156 = arith.addf %155, %7 : vector<8x32xf32>
    %cst_57 = arith.constant 5.000000e-01 : f32
    %157 = arith.mulf %cst_57, %142 : f32
    %158 = vector.broadcast %157 : f32 to vector<8x32xf32>
    %159 = arith.mulf %158, %156 : vector<8x32xf32>
    %160 = arith.addf %140, %159 : vector<8x32xf32>
    %cst_58 = arith.constant dense<0.000000e+00> : vector<8x64xf32>
    %161 = tpu.matmul %160, %0, %cst_58 {dimension_numbers = #tpu.dot_dimension_numbers<[1], [0], [0], [1], [0, 0, 1, 1], [], []>} : vector<8x32xf32>, vector<32x64xf32>, vector<8x64xf32> -> vector<8x64xf32>
    %162 = arith.addf %161, %4 : vector<8x64xf32>
    %163 = math.tanh %162 : vector<8x64xf32>
    %cst_59 = arith.constant dense<0.000000e+00> : vector<8x32xf32>
    %164 = tpu.matmul %163, %1, %cst_59 {dimension_numbers = #tpu.dot_dimension_numbers<[1], [0], [0], [1], [0, 0, 1, 1], [], []>} : vector<8x64xf32>, vector<64x32xf32>, vector<8x32xf32> -> vector<8x32xf32>
    %165 = arith.addf %164, %7 : vector<8x32xf32>
    %166 = vector.broadcast %142 : f32 to vector<8x32xf32>
    %167 = arith.mulf %166, %165 : vector<8x32xf32>
    %168 = arith.addf %140, %167 : vector<8x32xf32>
    %cst_60 = arith.constant dense<0.000000e+00> : vector<8x64xf32>
    %169 = tpu.matmul %168, %0, %cst_60 {dimension_numbers = #tpu.dot_dimension_numbers<[1], [0], [0], [1], [0, 0, 1, 1], [], []>} : vector<8x32xf32>, vector<32x64xf32>, vector<8x64xf32> -> vector<8x64xf32>
    %170 = arith.addf %169, %4 : vector<8x64xf32>
    %171 = math.tanh %170 : vector<8x64xf32>
    %cst_61 = arith.constant dense<0.000000e+00> : vector<8x32xf32>
    %172 = tpu.matmul %171, %1, %cst_61 {dimension_numbers = #tpu.dot_dimension_numbers<[1], [0], [0], [1], [0, 0, 1, 1], [], []>} : vector<8x64xf32>, vector<64x32xf32>, vector<8x32xf32> -> vector<8x32xf32>
    %173 = arith.addf %172, %7 : vector<8x32xf32>
    %cst_62 = arith.constant 6.000000e+00 : f32
    %174 = arith.divf %142, %cst_62 : f32
    %cst_63 = arith.constant 2.000000e+00 : f32
    %175 = vector.broadcast %cst_63 : f32 to vector<8x32xf32>
    %176 = arith.mulf %175, %156 : vector<8x32xf32>
    %177 = arith.addf %147, %176 : vector<8x32xf32>
    %cst_64 = arith.constant 2.000000e+00 : f32
    %178 = vector.broadcast %cst_64 : f32 to vector<8x32xf32>
    %179 = arith.mulf %178, %165 : vector<8x32xf32>
    %180 = arith.addf %177, %179 : vector<8x32xf32>
    %181 = arith.addf %180, %173 : vector<8x32xf32>
    %182 = vector.broadcast %174 : f32 to vector<8x32xf32>
    %183 = arith.mulf %182, %181 : vector<8x32xf32>
    %184 = arith.addf %140, %183 : vector<8x32xf32>
    %c0_65 = arith.constant 0 : index
    %c128 = arith.constant 128 : index
    %185 = vector.load %arg7[%c0_65, %c128] : memref<8x256xf32, #tpu.memory_space<vmem>>, vector<8x32xf32>
    tpu.vector_store %arg7[%c0_65, %c128], %184 {strides = array<i32>} : memref<8x256xf32, #tpu.memory_space<vmem>>, vector<8x32xf32>,
    %c5 = arith.constant 5 : index
    %186 = memref.load %arg1[%c5] : memref<8xf32, #tpu.memory_space<smem>>
    %cst_66 = arith.constant dense<0.000000e+00> : vector<8x64xf32>
    %187 = tpu.matmul %184, %0, %cst_66 {dimension_numbers = #tpu.dot_dimension_numbers<[1], [0], [0], [1], [0, 0, 1, 1], [], []>} : vector<8x32xf32>, vector<32x64xf32>, vector<8x64xf32> -> vector<8x64xf32>
    %188 = arith.addf %187, %4 : vector<8x64xf32>
    %189 = math.tanh %188 : vector<8x64xf32>
    %cst_67 = arith.constant dense<0.000000e+00> : vector<8x32xf32>
    %190 = tpu.matmul %189, %1, %cst_67 {dimension_numbers = #tpu.dot_dimension_numbers<[1], [0], [0], [1], [0, 0, 1, 1], [], []>} : vector<8x64xf32>, vector<64x32xf32>, vector<8x32xf32> -> vector<8x32xf32>
    %191 = arith.addf %190, %7 : vector<8x32xf32>
    %cst_68 = arith.constant 5.000000e-01 : f32
    %192 = arith.mulf %cst_68, %186 : f32
    %193 = vector.broadcast %192 : f32 to vector<8x32xf32>
    %194 = arith.mulf %193, %191 : vector<8x32xf32>
    %195 = arith.addf %184, %194 : vector<8x32xf32>
    %cst_69 = arith.constant dense<0.000000e+00> : vector<8x64xf32>
    %196 = tpu.matmul %195, %0, %cst_69 {dimension_numbers = #tpu.dot_dimension_numbers<[1], [0], [0], [1], [0, 0, 1, 1], [], []>} : vector<8x32xf32>, vector<32x64xf32>, vector<8x64xf32> -> vector<8x64xf32>
    %197 = arith.addf %196, %4 : vector<8x64xf32>
    %198 = math.tanh %197 : vector<8x64xf32>
    %cst_70 = arith.constant dense<0.000000e+00> : vector<8x32xf32>
    %199 = tpu.matmul %198, %1, %cst_70 {dimension_numbers = #tpu.dot_dimension_numbers<[1], [0], [0], [1], [0, 0, 1, 1], [], []>} : vector<8x64xf32>, vector<64x32xf32>, vector<8x32xf32> -> vector<8x32xf32>
    %200 = arith.addf %199, %7 : vector<8x32xf32>
    %cst_71 = arith.constant 5.000000e-01 : f32
    %201 = arith.mulf %cst_71, %186 : f32
    %202 = vector.broadcast %201 : f32 to vector<8x32xf32>
    %203 = arith.mulf %202, %200 : vector<8x32xf32>
    %204 = arith.addf %184, %203 : vector<8x32xf32>
    %cst_72 = arith.constant dense<0.000000e+00> : vector<8x64xf32>
    %205 = tpu.matmul %204, %0, %cst_72 {dimension_numbers = #tpu.dot_dimension_numbers<[1], [0], [0], [1], [0, 0, 1, 1], [], []>} : vector<8x32xf32>, vector<32x64xf32>, vector<8x64xf32> -> vector<8x64xf32>
    %206 = arith.addf %205, %4 : vector<8x64xf32>
    %207 = math.tanh %206 : vector<8x64xf32>
    %cst_73 = arith.constant dense<0.000000e+00> : vector<8x32xf32>
    %208 = tpu.matmul %207, %1, %cst_73 {dimension_numbers = #tpu.dot_dimension_numbers<[1], [0], [0], [1], [0, 0, 1, 1], [], []>} : vector<8x64xf32>, vector<64x32xf32>, vector<8x32xf32> -> vector<8x32xf32>
    %209 = arith.addf %208, %7 : vector<8x32xf32>
    %210 = vector.broadcast %186 : f32 to vector<8x32xf32>
    %211 = arith.mulf %210, %209 : vector<8x32xf32>
    %212 = arith.addf %184, %211 : vector<8x32xf32>
    %cst_74 = arith.constant dense<0.000000e+00> : vector<8x64xf32>
    %213 = tpu.matmul %212, %0, %cst_74 {dimension_numbers = #tpu.dot_dimension_numbers<[1], [0], [0], [1], [0, 0, 1, 1], [], []>} : vector<8x32xf32>, vector<32x64xf32>, vector<8x64xf32> -> vector<8x64xf32>
    %214 = arith.addf %213, %4 : vector<8x64xf32>
    %215 = math.tanh %214 : vector<8x64xf32>
    %cst_75 = arith.constant dense<0.000000e+00> : vector<8x32xf32>
    %216 = tpu.matmul %215, %1, %cst_75 {dimension_numbers = #tpu.dot_dimension_numbers<[1], [0], [0], [1], [0, 0, 1, 1], [], []>} : vector<8x64xf32>, vector<64x32xf32>, vector<8x32xf32> -> vector<8x32xf32>
    %217 = arith.addf %216, %7 : vector<8x32xf32>
    %cst_76 = arith.constant 6.000000e+00 : f32
    %218 = arith.divf %186, %cst_76 : f32
    %cst_77 = arith.constant 2.000000e+00 : f32
    %219 = vector.broadcast %cst_77 : f32 to vector<8x32xf32>
    %220 = arith.mulf %219, %200 : vector<8x32xf32>
    %221 = arith.addf %191, %220 : vector<8x32xf32>
    %cst_78 = arith.constant 2.000000e+00 : f32
    %222 = vector.broadcast %cst_78 : f32 to vector<8x32xf32>
    %223 = arith.mulf %222, %209 : vector<8x32xf32>
    %224 = arith.addf %221, %223 : vector<8x32xf32>
    %225 = arith.addf %224, %217 : vector<8x32xf32>
    %226 = vector.broadcast %218 : f32 to vector<8x32xf32>
    %227 = arith.mulf %226, %225 : vector<8x32xf32>
    %228 = arith.addf %184, %227 : vector<8x32xf32>
    %c0_79 = arith.constant 0 : index
    %c160 = arith.constant 160 : index
    %229 = vector.load %arg7[%c0_79, %c160] : memref<8x256xf32, #tpu.memory_space<vmem>>, vector<8x32xf32>
    tpu.vector_store %arg7[%c0_79, %c160], %228 {strides = array<i32>} : memref<8x256xf32, #tpu.memory_space<vmem>>, vector<8x32xf32>,
    %c6 = arith.constant 6 : index
    %230 = memref.load %arg1[%c6] : memref<8xf32, #tpu.memory_space<smem>>
    %cst_80 = arith.constant dense<0.000000e+00> : vector<8x64xf32>
    %231 = tpu.matmul %228, %0, %cst_80 {dimension_numbers = #tpu.dot_dimension_numbers<[1], [0], [0], [1], [0, 0, 1, 1], [], []>} : vector<8x32xf32>, vector<32x64xf32>, vector<8x64xf32> -> vector<8x64xf32>
    %232 = arith.addf %231, %4 : vector<8x64xf32>
    %233 = math.tanh %232 : vector<8x64xf32>
    %cst_81 = arith.constant dense<0.000000e+00> : vector<8x32xf32>
    %234 = tpu.matmul %233, %1, %cst_81 {dimension_numbers = #tpu.dot_dimension_numbers<[1], [0], [0], [1], [0, 0, 1, 1], [], []>} : vector<8x64xf32>, vector<64x32xf32>, vector<8x32xf32> -> vector<8x32xf32>
    %235 = arith.addf %234, %7 : vector<8x32xf32>
    %cst_82 = arith.constant 5.000000e-01 : f32
    %236 = arith.mulf %cst_82, %230 : f32
    %237 = vector.broadcast %236 : f32 to vector<8x32xf32>
    %238 = arith.mulf %237, %235 : vector<8x32xf32>
    %239 = arith.addf %228, %238 : vector<8x32xf32>
    %cst_83 = arith.constant dense<0.000000e+00> : vector<8x64xf32>
    %240 = tpu.matmul %239, %0, %cst_83 {dimension_numbers = #tpu.dot_dimension_numbers<[1], [0], [0], [1], [0, 0, 1, 1], [], []>} : vector<8x32xf32>, vector<32x64xf32>, vector<8x64xf32> -> vector<8x64xf32>
    %241 = arith.addf %240, %4 : vector<8x64xf32>
    %242 = math.tanh %241 : vector<8x64xf32>
    %cst_84 = arith.constant dense<0.000000e+00> : vector<8x32xf32>
    %243 = tpu.matmul %242, %1, %cst_84 {dimension_numbers = #tpu.dot_dimension_numbers<[1], [0], [0], [1], [0, 0, 1, 1], [], []>} : vector<8x64xf32>, vector<64x32xf32>, vector<8x32xf32> -> vector<8x32xf32>
    %244 = arith.addf %243, %7 : vector<8x32xf32>
    %cst_85 = arith.constant 5.000000e-01 : f32
    %245 = arith.mulf %cst_85, %230 : f32
    %246 = vector.broadcast %245 : f32 to vector<8x32xf32>
    %247 = arith.mulf %246, %244 : vector<8x32xf32>
    %248 = arith.addf %228, %247 : vector<8x32xf32>
    %cst_86 = arith.constant dense<0.000000e+00> : vector<8x64xf32>
    %249 = tpu.matmul %248, %0, %cst_86 {dimension_numbers = #tpu.dot_dimension_numbers<[1], [0], [0], [1], [0, 0, 1, 1], [], []>} : vector<8x32xf32>, vector<32x64xf32>, vector<8x64xf32> -> vector<8x64xf32>
    %250 = arith.addf %249, %4 : vector<8x64xf32>
    %251 = math.tanh %250 : vector<8x64xf32>
    %cst_87 = arith.constant dense<0.000000e+00> : vector<8x32xf32>
    %252 = tpu.matmul %251, %1, %cst_87 {dimension_numbers = #tpu.dot_dimension_numbers<[1], [0], [0], [1], [0, 0, 1, 1], [], []>} : vector<8x64xf32>, vector<64x32xf32>, vector<8x32xf32> -> vector<8x32xf32>
    %253 = arith.addf %252, %7 : vector<8x32xf32>
    %254 = vector.broadcast %230 : f32 to vector<8x32xf32>
    %255 = arith.mulf %254, %253 : vector<8x32xf32>
    %256 = arith.addf %228, %255 : vector<8x32xf32>
    %cst_88 = arith.constant dense<0.000000e+00> : vector<8x64xf32>
    %257 = tpu.matmul %256, %0, %cst_88 {dimension_numbers = #tpu.dot_dimension_numbers<[1], [0], [0], [1], [0, 0, 1, 1], [], []>} : vector<8x32xf32>, vector<32x64xf32>, vector<8x64xf32> -> vector<8x64xf32>
    %258 = arith.addf %257, %4 : vector<8x64xf32>
    %259 = math.tanh %258 : vector<8x64xf32>
    %cst_89 = arith.constant dense<0.000000e+00> : vector<8x32xf32>
    %260 = tpu.matmul %259, %1, %cst_89 {dimension_numbers = #tpu.dot_dimension_numbers<[1], [0], [0], [1], [0, 0, 1, 1], [], []>} : vector<8x64xf32>, vector<64x32xf32>, vector<8x32xf32> -> vector<8x32xf32>
    %261 = arith.addf %260, %7 : vector<8x32xf32>
    %cst_90 = arith.constant 6.000000e+00 : f32
    %262 = arith.divf %230, %cst_90 : f32
    %cst_91 = arith.constant 2.000000e+00 : f32
    %263 = vector.broadcast %cst_91 : f32 to vector<8x32xf32>
    %264 = arith.mulf %263, %244 : vector<8x32xf32>
    %265 = arith.addf %235, %264 : vector<8x32xf32>
    %cst_92 = arith.constant 2.000000e+00 : f32
    %266 = vector.broadcast %cst_92 : f32 to vector<8x32xf32>
    %267 = arith.mulf %266, %253 : vector<8x32xf32>
    %268 = arith.addf %265, %267 : vector<8x32xf32>
    %269 = arith.addf %268, %261 : vector<8x32xf32>
    %270 = vector.broadcast %262 : f32 to vector<8x32xf32>
    %271 = arith.mulf %270, %269 : vector<8x32xf32>
    %272 = arith.addf %228, %271 : vector<8x32xf32>
    %c0_93 = arith.constant 0 : index
    %c192 = arith.constant 192 : index
    %273 = vector.load %arg7[%c0_93, %c192] : memref<8x256xf32, #tpu.memory_space<vmem>>, vector<8x32xf32>
    tpu.vector_store %arg7[%c0_93, %c192], %272 {strides = array<i32>} : memref<8x256xf32, #tpu.memory_space<vmem>>, vector<8x32xf32>,
    %c7 = arith.constant 7 : index
    %274 = memref.load %arg1[%c7] : memref<8xf32, #tpu.memory_space<smem>>
    %cst_94 = arith.constant dense<0.000000e+00> : vector<8x64xf32>
    %275 = tpu.matmul %272, %0, %cst_94 {dimension_numbers = #tpu.dot_dimension_numbers<[1], [0], [0], [1], [0, 0, 1, 1], [], []>} : vector<8x32xf32>, vector<32x64xf32>, vector<8x64xf32> -> vector<8x64xf32>
    %276 = arith.addf %275, %4 : vector<8x64xf32>
    %277 = math.tanh %276 : vector<8x64xf32>
    %cst_95 = arith.constant dense<0.000000e+00> : vector<8x32xf32>
    %278 = tpu.matmul %277, %1, %cst_95 {dimension_numbers = #tpu.dot_dimension_numbers<[1], [0], [0], [1], [0, 0, 1, 1], [], []>} : vector<8x64xf32>, vector<64x32xf32>, vector<8x32xf32> -> vector<8x32xf32>
    %279 = arith.addf %278, %7 : vector<8x32xf32>
    %cst_96 = arith.constant 5.000000e-01 : f32
    %280 = arith.mulf %cst_96, %274 : f32
    %281 = vector.broadcast %280 : f32 to vector<8x32xf32>
    %282 = arith.mulf %281, %279 : vector<8x32xf32>
    %283 = arith.addf %272, %282 : vector<8x32xf32>
    %cst_97 = arith.constant dense<0.000000e+00> : vector<8x64xf32>
    %284 = tpu.matmul %283, %0, %cst_97 {dimension_numbers = #tpu.dot_dimension_numbers<[1], [0], [0], [1], [0, 0, 1, 1], [], []>} : vector<8x32xf32>, vector<32x64xf32>, vector<8x64xf32> -> vector<8x64xf32>
    %285 = arith.addf %284, %4 : vector<8x64xf32>
    %286 = math.tanh %285 : vector<8x64xf32>
    %cst_98 = arith.constant dense<0.000000e+00> : vector<8x32xf32>
    %287 = tpu.matmul %286, %1, %cst_98 {dimension_numbers = #tpu.dot_dimension_numbers<[1], [0], [0], [1], [0, 0, 1, 1], [], []>} : vector<8x64xf32>, vector<64x32xf32>, vector<8x32xf32> -> vector<8x32xf32>
    %288 = arith.addf %287, %7 : vector<8x32xf32>
    %cst_99 = arith.constant 5.000000e-01 : f32
    %289 = arith.mulf %cst_99, %274 : f32
    %290 = vector.broadcast %289 : f32 to vector<8x32xf32>
    %291 = arith.mulf %290, %288 : vector<8x32xf32>
    %292 = arith.addf %272, %291 : vector<8x32xf32>
    %cst_100 = arith.constant dense<0.000000e+00> : vector<8x64xf32>
    %293 = tpu.matmul %292, %0, %cst_100 {dimension_numbers = #tpu.dot_dimension_numbers<[1], [0], [0], [1], [0, 0, 1, 1], [], []>} : vector<8x32xf32>, vector<32x64xf32>, vector<8x64xf32> -> vector<8x64xf32>
    %294 = arith.addf %293, %4 : vector<8x64xf32>
    %295 = math.tanh %294 : vector<8x64xf32>
    %cst_101 = arith.constant dense<0.000000e+00> : vector<8x32xf32>
    %296 = tpu.matmul %295, %1, %cst_101 {dimension_numbers = #tpu.dot_dimension_numbers<[1], [0], [0], [1], [0, 0, 1, 1], [], []>} : vector<8x64xf32>, vector<64x32xf32>, vector<8x32xf32> -> vector<8x32xf32>
    %297 = arith.addf %296, %7 : vector<8x32xf32>
    %298 = vector.broadcast %274 : f32 to vector<8x32xf32>
    %299 = arith.mulf %298, %297 : vector<8x32xf32>
    %300 = arith.addf %272, %299 : vector<8x32xf32>
    %cst_102 = arith.constant dense<0.000000e+00> : vector<8x64xf32>
    %301 = tpu.matmul %300, %0, %cst_102 {dimension_numbers = #tpu.dot_dimension_numbers<[1], [0], [0], [1], [0, 0, 1, 1], [], []>} : vector<8x32xf32>, vector<32x64xf32>, vector<8x64xf32> -> vector<8x64xf32>
    %302 = arith.addf %301, %4 : vector<8x64xf32>
    %303 = math.tanh %302 : vector<8x64xf32>
    %cst_103 = arith.constant dense<0.000000e+00> : vector<8x32xf32>
    %304 = tpu.matmul %303, %1, %cst_103 {dimension_numbers = #tpu.dot_dimension_numbers<[1], [0], [0], [1], [0, 0, 1, 1], [], []>} : vector<8x64xf32>, vector<64x32xf32>, vector<8x32xf32> -> vector<8x32xf32>
    %305 = arith.addf %304, %7 : vector<8x32xf32>
    %cst_104 = arith.constant 6.000000e+00 : f32
    %306 = arith.divf %274, %cst_104 : f32
    %cst_105 = arith.constant 2.000000e+00 : f32
    %307 = vector.broadcast %cst_105 : f32 to vector<8x32xf32>
    %308 = arith.mulf %307, %288 : vector<8x32xf32>
    %309 = arith.addf %279, %308 : vector<8x32xf32>
    %cst_106 = arith.constant 2.000000e+00 : f32
    %310 = vector.broadcast %cst_106 : f32 to vector<8x32xf32>
    %311 = arith.mulf %310, %297 : vector<8x32xf32>
    %312 = arith.addf %309, %311 : vector<8x32xf32>
    %313 = arith.addf %312, %305 : vector<8x32xf32>
    %314 = vector.broadcast %306 : f32 to vector<8x32xf32>
    %315 = arith.mulf %314, %313 : vector<8x32xf32>
    %316 = arith.addf %272, %315 : vector<8x32xf32>
    %c0_107 = arith.constant 0 : index
    %c224 = arith.constant 224 : index
    %317 = vector.load %arg7[%c0_107, %c224] : memref<8x256xf32, #tpu.memory_space<vmem>>, vector<8x32xf32>
    tpu.vector_store %arg7[%c0_107, %c224], %316 {strides = array<i32>} : memref<8x256xf32, #tpu.memory_space<vmem>>, vector<8x32xf32>,
    return
  }
  func.func @transform_0(%arg0: i32, %arg1: memref<8xf32, #tpu.memory_space<smem>>) -> (i32, i32) {
    %c0_i32 = arith.constant 0 : i32
    %c0_i32_0 = arith.constant 0 : i32
    %c0_i32_1 = arith.constant 0 : i32
    return %c0_i32, %c0_i32_0 : i32, i32
  }
  func.func @transform_1(%arg0: i32, %arg1: memref<8xf32, #tpu.memory_space<smem>>) -> (i32, i32) {
    %c0_i32 = arith.constant 0 : i32
    %c0_i32_0 = arith.constant 0 : i32
    %c0_i32_1 = arith.constant 0 : i32
    return %c0_i32, %c0_i32_0 : i32, i32
  }
  func.func @transform_2(%arg0: i32, %arg1: memref<8xf32, #tpu.memory_space<smem>>) -> (i32, i32) {
    %c0_i32 = arith.constant 0 : i32
    %c0_i32_0 = arith.constant 0 : i32
    %c0_i32_1 = arith.constant 0 : i32
    return %c0_i32, %c0_i32_0 : i32, i32
  }
  func.func @transform_3(%arg0: i32, %arg1: memref<8xf32, #tpu.memory_space<smem>>) -> (i32, i32) {
    %c0_i32 = arith.constant 0 : i32
    %c0_i32_0 = arith.constant 0 : i32
    %c0_i32_1 = arith.constant 0 : i32
    return %c0_i32, %c0_i32_0 : i32, i32
  }
  func.func @transform_4(%arg0: i32, %arg1: memref<8xf32, #tpu.memory_space<smem>>) -> (i32, i32) {
    %c0_i32 = arith.constant 0 : i32
    %c0_i32_0 = arith.constant 0 : i32
    %c0_i32_1 = arith.constant 0 : i32
    return %c0_i32, %c0_i32_0 : i32, i32
  }
  func.func @transform_5(%arg0: i32, %arg1: memref<8xf32, #tpu.memory_space<smem>>) -> (i32, i32) {
    %c0_i32 = arith.constant 0 : i32
    %c0_i32_0 = arith.constant 0 : i32
    %c0_i32_1 = arith.constant 0 : i32
    return %c0_i32, %c0_i32_0 : i32, i32
  }
}

</mosaic_0001>

<bundles_post_ra>
// kernel: tpu_custom_call.1
= control target key start
LH: loop header
LB: loop body
LE: loop exit
PB: predicated region body
PF: predicated region fallthrough
CT: control target
= control target key end

     0   :  { %s7022_s0 = inlined_call_operand.vmem [shape: f32[8], index: 0, kind: input, shape index: {}]   ;;  %s7023_s1 = inlined_call_operand.vmem [shape: f32[8,32], index: 1, kind: input, shape index: {}]   ;;  %s7024_s2 = inlined_call_operand.vmem [shape: f32[32,64], index: 2, kind: input, shape index: {}]   ;;  %s7025_s3 = inlined_call_operand.vmem [shape: f32[1,64], index: 3, kind: input, shape index: {}]   ;;  %s7026_s4 = inlined_call_operand.vmem [shape: f32[64,32], index: 4, kind: input, shape index: {}]   ;;  %s7027_s5 = inlined_call_operand.vmem [shape: f32[1,32], index: 5, kind: input, shape index: {}]   ;;  %s7028_s6 = inlined_call_operand.hbm [shape: f32[8,256], index: 6, kind: output, shape index: {}]  }
   0x1   :  { %s11_s23 = sshll.u32 %s7022_s0, 4  ;;  %s12_s23 = int_to_ptr.vmem [resolvable:$true] %s11_s23 }
   0x2   :  { %s5752_s24 = scalar_lea.vmem %s12_s23, 16  ;;  %p5757_p1 = scmp.lt.s32.totalorder %s12_s23, %s12_s23 }
   0x3   :  { %p5753_p0 = scmp.ne.s32.totalorder %s12_s23, %s5752_s24  ;;  %p5758_p2 = scmp.lt.s32.totalorder %s5752_s24, %s5752_s24 }
   0x5   :  { %p5759_p3 = por %p5758_p2, %p5757_p1 }
   0x7   :  { %p5760_p4 = pnand %p5759_p3, %p5753_p0 }
   0x9   :  { %5763 = shalt.err (!%p5760_p4)  }
   0xa   :  { %s5788_s25 = smov [#allocation3]  }
   0xb   :  { %14 = dma.vmem_to_smem %s12_s23, 16, %s5788_s25, [#allocation2] }
   0xc   :  { %5784 = dma.done.wait [#allocation2], 16 }
   0xd   :  { %5785 = vsyncadd [#allocation2], 4294967280 }
   0xe   :  { %16 = sfence }
   0xf   :  { %v5836_v0 = vld [vmem:[%s7024_s2 + $0x18] sm:$0xff]  ;;  %v5789_v1 = vmov 0.0   ;;  %v5842_v2 = vld [vmem:[%s7024_s2 + $0x10] sm:$0xff]  ;;  %vm5790_vm0 = vmmov 0   ;;  %v5849_v3 = vld [vmem:[%s7023_s1] sm:$0xff]  ;;  %vm55_vm1 = vcmask 261120  }
  0x10   :  { %4821 = vmatprep.subr.mxu1 %v5789_v1  ;;  %4829 = vmatprep.mubr.msk.f32.mxu1 %vm5790_vm0, %v5789_v1  ;;  %56 = vst.msk [vmem:[#allocation4] sm:$0xff] %vm55_vm1, %v5849_v3 }
  0x11   :  { %4822 = vmatpush3.msra.mxu1 %v5836_v0  ;;  %4851 = vmatprep.subr.mxu0 %v5789_v1 }
  0x12   :  { %17 = vsyncpa [#allocation5], 0  ;;  %4823 = vmatprep.subr.mxu1 %v5789_v1  ;;  %v5859_v4 = vld [vmem:[%s7024_s2 + $0x8] sm:$0xff]  ;;  %4852 = vmatpush3.msra.mxu0 %v5836_v0  ;;  %v5868_v5 = vld [vmem:[%s7024_s2] sm:$0xff]  ;;  %vm132_vm2 = vcmask 523264   ;;  %s5959_s0 = sld [smem:[#allocation3 + $0x1]] }
  0x13   :  { %4824 = vmatpush3.msra.mxu1 %v5842_v2  ;;  %4853 = vmatprep.subr.mxu0 %v5789_v1  ;;  %v5889_v6 = vld [vmem:[%s7026_s4 + $0x38] sm:$0xff]  ;;  %v5896_v7 = vld [vmem:[%s7026_s4 + $0x30] sm:$0xff]  ;;  %v5901_v8 = vld [vmem:[%s7026_s4 + $0x28] sm:$0xff]  ;;  %s5791_s8 = smov 32   ;;  %vm671_vm3 = vcmask 523520   ;;  %s6111_s1 = sld [smem:[#allocation3 + $0x2]] }
  0x14   :  { %4825 = vmatprep.subr.mxu1 %v5789_v1  ;;  %4854 = vmatpush3.msra.mxu0 %v5842_v2  ;;  %v5908_v9 = vld [vmem:[%s7026_s4 + $0x20] sm:$0xff]  ;;  %v5915_v10 = vld [vmem:[%s7026_s4 + $0x18] sm:$0xff]  ;;  %v5922_v11 = vld [vmem:[%s7026_s4 + $0x10] sm:$0xff]  ;;  %s5792_s11 = smov 64   ;;  %vm1285_vm4 = vcmask 785920   ;;  %s6258_s12 = sld [smem:[#allocation3 + $0x3]] }
  0x15   :  { %4826 = vmatpush3.msra.mxu1 %v5859_v4  ;;  %4855 = vmatprep.subr.mxu0 %v5789_v1  ;;  %v5929_v12 = vld [vmem:[%s7026_s4 + $0x8] sm:$0xff]  ;;  %v5936_v13 = vld [vmem:[%s7026_s4] sm:$0xff]  ;;  %s6422_s23 = sld [smem:[#allocation3 + $0x4]]  ;;  %s5793_s25 = smov 96   ;;  %vm1899_vm5 = vcmask 1048320  }
  0x16   :  { %4827 = vmatprep.subr.mxu1 %v5789_v1  ;;  %4856 = vmatpush3.msra.mxu0 %v5859_v4  ;;  %v5945_v14 = vld [vmem:[%s7025_s3] ss:$0 sm:$0xff] }
  0x17   :  { %4828 = vmatpush3.msra.mxu1 %v5868_v5  ;;  %4857 = vmatprep.subr.mxu0 %v5789_v1  ;;  %v5965_v19 = vld [vmem:[%s7027_s5] ss:$0 sm:$0xff] }
  0x18   :  { %4830 = vmatmul.mubr.msk.f32.vlgmr.msra.gmra.mxu1 %vm55_vm1, %v5849_v3  ;;  %4832 = vmatprep.subr.mxu1 %v5789_v1  ;;  %s206_s28 = smul.f32 0.5, %s5959_s0  ;;  %v506_v41 = vstv %s5959_s0 }
  0x19   :  { %4848 = vmatprep.mubr.msk.f32.mxu1 %vm5790_vm0, %v5789_v1  ;;  %4858 = vmatpush3.msra.mxu0 %v5868_v5  ;;  %s658_s7 = smul.f32 0.16666667, %s5959_s0 }
  0x1a   :  { %4859 = vmatprep.mubr.msk.f32.mxu0 %vm5790_vm0, %v5789_v1  ;;  %4862 = vmatprep.subr.mxu0 %v5789_v1  ;;  %v207_v21 = vstv %s206_s28  ;;  %s820_s9 = smul.f32 0.5, %s6111_s1 }
  0x1b   :  { %4833 = vmatpush3.msra.mxu1 %v5889_v6  ;;  %v664_v55 = vstv %s658_s7  ;;  %s1272_s10 = smul.f32 0.16666667, %s6111_s1 }
  0x1c   :  { %4834 = vmatprep.subr.mxu1 %v5789_v1  ;;  %s1434_s13 = smul.f32 0.5, %s6258_s12 }
  0x1d   :  { %4835 = vmatpush3.msra.mxu1 %v5896_v7  ;;  %s1886_s22 = smul.f32 0.16666667, %s6258_s12 }
  0x1e   :  { %4836 = vmatprep.subr.mxu1 %v5789_v1  ;;  %s2048_s24 = smul.f32 0.5, %s6422_s23 }
  0x1f   :  { %4837 = vmatpush3.msra.mxu1 %v5901_v8  ;;  %s2500_s21 = smul.f32 0.16666667, %s6422_s23 }
  0x20   :  { %4838 = vmatprep.subr.mxu1 %v5789_v1 }
  0x21   :  { %4839 = vmatpush3.msra.mxu1 %v5908_v9 }
  0x22   :  { %4840 = vmatprep.subr.mxu1 %v5789_v1 }
  0x23   :  { %4841 = vmatpush3.msra.mxu1 %v5915_v10 }
  0x24   :  { %4842 = vmatprep.subr.mxu1 %v5789_v1 }
  0x25   :  { %4843 = vmatpush3.msra.mxu1 %v5922_v11 }
  0x26   :  { %4844 = vmatprep.subr.mxu1 %v5789_v1 }
  0x27   :  { %4845 = vmatpush3.msra.mxu1 %v5929_v12 }
  0x28   :  { %4846 = vmatprep.subr.mxu1 %v5789_v1 }
  0x29   :  { %4847 = vmatpush3.msra.mxu1 %v5936_v13 }
  0x2a   :  { %4881 = vmatprep.subr.mxu1 %v5789_v1 }
  0xd8   :  { %v127_v15 = vpop.f32.mrf.mxu1 }
  0xd9   :  { %v128_v16 = vadd.f32 %v5945_v14, %v127_v15 }
  0xda   :  { %v4831_v17 = vpop.f32.mrf.mxu1 }
  0xdb   :  { %5668 = vtanh.f32 %v128_v16  ;;  %v821_v16 = vstv %s820_s9 }
  0xe8   :  { %v5669_v18 = vpop.eup %5668 }
  0xe9   :  { %4849 = vmatmul.mubr.msk.f32.vlgmr.msra.gmra.mxu1 %vm132_vm2, %v5669_v18 }
  0xea   :  { %4882 = vmatpush3.msra.mxu1 %v5836_v0  ;;  %4889 = vmatprep.mubr.msk.f32.mxu1 %vm5790_vm0, %v5789_v1 }
  0xeb   :  { %4883 = vmatprep.subr.mxu1 %v5789_v1 }
  0xec   :  { %4884 = vmatpush3.msra.mxu1 %v5842_v2 }
  0xed   :  { %4885 = vmatprep.subr.mxu1 %v5789_v1 }
  0xee   :  { %4886 = vmatpush3.msra.mxu1 %v5859_v4 }
  0xef   :  { %4887 = vmatprep.subr.mxu1 %v5789_v1 }
  0xf0   :  { %4888 = vmatpush3.msra.mxu1 %v5868_v5 }
  0xf1   :  { %4892 = vmatprep.subr.mxu1 %v5789_v1 }
 0x1a9   :  { %v202_v20 = vpop.f32.mrf.mxu1 }
 0x1aa   :  { %v5968_v22 = vadd.f32 %v5965_v19, %v202_v20 }
 0x1ab   :  { %v4850_v23 = vpop.f32.mrf.mxu1 }
 0x1ac   :  { %v208_v24 = vmul.f32 %v207_v21, %v5968_v22 }
 0x1ae   :  { %v209_v25 = vadd.f32 %v208_v24, %v5849_v3 }
 0x1b0   :  { %4860 = vmatmul.mubr.msk.f32.vlgmr.msra.gmra.mxu0 %vm55_vm1, %v209_v25 }
 0x1b1   :  { %4863 = vmatpush3.msra.mxu0 %v5889_v6  ;;  %4878 = vmatprep.mubr.msk.f32.mxu0 %vm5790_vm0, %v5789_v1 }
 0x1b2   :  { %4864 = vmatprep.subr.mxu0 %v5789_v1 }
 0x1b3   :  { %4865 = vmatpush3.msra.mxu0 %v5896_v7 }
 0x1b4   :  { %4866 = vmatprep.subr.mxu0 %v5789_v1 }
 0x1b5   :  { %4867 = vmatpush3.msra.mxu0 %v5901_v8 }
 0x1b6   :  { %4868 = vmatprep.subr.mxu0 %v5789_v1 }
 0x1b7   :  { %4869 = vmatpush3.msra.mxu0 %v5908_v9 }
 0x1b8   :  { %4870 = vmatprep.subr.mxu0 %v5789_v1 }
 0x1b9   :  { %4871 = vmatpush3.msra.mxu0 %v5915_v10 }
 0x1ba   :  { %4872 = vmatprep.subr.mxu0 %v5789_v1 }
 0x1bb   :  { %4873 = vmatpush3.msra.mxu0 %v5922_v11 }
 0x1bc   :  { %4874 = vmatprep.subr.mxu0 %v5789_v1 }
 0x1bd   :  { %4875 = vmatpush3.msra.mxu0 %v5929_v12 }
 0x1be   :  { %4876 = vmatprep.subr.mxu0 %v5789_v1 }
 0x1bf   :  { %4877 = vmatpush3.msra.mxu0 %v5936_v13 }
 0x1c0   :  { %4911 = vmatprep.subr.mxu0 %v5789_v1 }
 0x270   :  { %v279_v26 = vpop.f32.mrf.mxu0 }
 0x271   :  { %v280_v27 = vadd.f32 %v5945_v14, %v279_v26 }
 0x272   :  { %v4861_v28 = vpop.f32.mrf.mxu0 }
 0x273   :  { %5670 = vtanh.f32 %v280_v27 }
 0x280   :  { %v5671_v29 = vpop.eup %5670 }
 0x281   :  { %4879 = vmatmul.mubr.msk.f32.vlgmr.msra.gmra.mxu0 %vm132_vm2, %v5671_v29 }
 0x282   :  { %4912 = vmatpush3.msra.mxu0 %v5836_v0  ;;  %4919 = vmatprep.mubr.msk.f32.mxu0 %vm5790_vm0, %v5789_v1 }
 0x283   :  { %4913 = vmatprep.subr.mxu0 %v5789_v1 }
 0x284   :  { %4914 = vmatpush3.msra.mxu0 %v5842_v2 }
 0x285   :  { %4915 = vmatprep.subr.mxu0 %v5789_v1 }
 0x286   :  { %4916 = vmatpush3.msra.mxu0 %v5859_v4 }
 0x287   :  { %4917 = vmatprep.subr.mxu0 %v5789_v1 }
 0x288   :  { %4918 = vmatpush3.msra.mxu0 %v5868_v5 }
 0x289   :  { %4922 = vmatprep.subr.mxu0 %v5789_v1 }
 0x341   :  { %v353_v30 = vpop.f32.mrf.mxu0 }
 0x342   :  { %v354_v31 = vadd.f32 %v5965_v19, %v353_v30 }
 0x343   :  { %v4880_v32 = vpop.f32.mrf.mxu0 }
 0x344   :  { %v357_v33 = vmul.f32 %v354_v31, %v207_v21  ;;  %v659_v39 = vmul.f32 2.0, %v354_v31 }
 0x346   :  { %v358_v34 = vadd.f32 %v357_v33, %v5849_v3  ;;  %v660_v44 = vadd.f32 %v659_v39, %v5968_v22 }
 0x348   :  { %4890 = vmatmul.mubr.msk.f32.vlgmr.msra.gmra.mxu1 %vm55_vm1, %v358_v34 }
 0x349   :  { %4893 = vmatpush3.msra.mxu1 %v5889_v6  ;;  %4908 = vmatprep.mubr.msk.f32.mxu1 %vm5790_vm0, %v5789_v1 }
 0x34a   :  { %4894 = vmatprep.subr.mxu1 %v5789_v1 }
 0x34b   :  { %4895 = vmatpush3.msra.mxu1 %v5896_v7 }
 0x34c   :  { %4896 = vmatprep.subr.mxu1 %v5789_v1 }
 0x34d   :  { %4897 = vmatpush3.msra.mxu1 %v5901_v8 }
 0x34e   :  { %4898 = vmatprep.subr.mxu1 %v5789_v1 }
 0x34f   :  { %4899 = vmatpush3.msra.mxu1 %v5908_v9 }
 0x350   :  { %4900 = vmatprep.subr.mxu1 %v5789_v1 }
 0x351   :  { %4901 = vmatpush3.msra.mxu1 %v5915_v10 }
 0x352   :  { %4902 = vmatprep.subr.mxu1 %v5789_v1 }
 0x353   :  { %4903 = vmatpush3.msra.mxu1 %v5922_v11 }
 0x354   :  { %4904 = vmatprep.subr.mxu1 %v5789_v1 }
 0x355   :  { %4905 = vmatpush3.msra.mxu1 %v5929_v12 }
 0x356   :  { %4906 = vmatprep.subr.mxu1 %v5789_v1 }
 0x357   :  { %4907 = vmatpush3.msra.mxu1 %v5936_v13 }
 0x358   :  { %4941 = vmatprep.subr.mxu1 %v5789_v1 }
 0x408   :  { %v428_v35 = vpop.f32.mrf.mxu1 }
 0x409   :  { %v429_v36 = vadd.f32 %v5945_v14, %v428_v35 }
 0x40a   :  { %v4891_v37 = vpop.f32.mrf.mxu1 }
 0x40b   :  { %5672 = vtanh.f32 %v429_v36  ;;  %v1120_v37 = vstv %s6111_s1 }
 0x418   :  { %v5673_v38 = vpop.eup %5672 }
 0x419   :  { %4909 = vmatmul.mubr.msk.f32.vlgmr.msra.gmra.mxu1 %vm132_vm2, %v5673_v38 }
 0x41a   :  { %4942 = vmatpush3.msra.mxu1 %v5836_v0  ;;  %4949 = vmatprep.mubr.msk.f32.mxu1 %vm5790_vm0, %v5789_v1 }
 0x41b   :  { %4943 = vmatprep.subr.mxu1 %v5789_v1 }
 0x41c   :  { %4944 = vmatpush3.msra.mxu1 %v5842_v2 }
 0x41d   :  { %4945 = vmatprep.subr.mxu1 %v5789_v1 }
 0x41e   :  { %4946 = vmatpush3.msra.mxu1 %v5859_v4 }
 0x41f   :  { %4947 = vmatprep.subr.mxu1 %v5789_v1 }
 0x420   :  { %4948 = vmatpush3.msra.mxu1 %v5868_v5 }
 0x421   :  { %4952 = vmatprep.subr.mxu1 %v5789_v1 }
 0x4d9   :  { %v502_v40 = vpop.f32.mrf.mxu1 }
 0x4da   :  { %v503_v42 = vadd.f32 %v5965_v19, %v502_v40 }
 0x4db   :  { %v4910_v43 = vpop.f32.mrf.mxu1 }
 0x4dc   :  { %v507_v45 = vmul.f32 %v506_v41, %v503_v42  ;;  %v661_v46 = vmul.f32 2.0, %v503_v42 }
 0x4de   :  { %v508_v47 = vadd.f32 %v507_v45, %v5849_v3  ;;  %v662_v48 = vadd.f32 %v661_v46, %v660_v44 }
 0x4e0   :  { %4920 = vmatmul.mubr.msk.f32.vlgmr.msra.gmra.mxu0 %vm55_vm1, %v508_v47 }
 0x4e1   :  { %4923 = vmatpush3.msra.mxu0 %v5889_v6  ;;  %4938 = vmatprep.mubr.msk.f32.mxu0 %vm5790_vm0, %v5789_v1 }
 0x4e2   :  { %4924 = vmatprep.subr.mxu0 %v5789_v1 }
 0x4e3   :  { %4925 = vmatpush3.msra.mxu0 %v5896_v7 }
 0x4e4   :  { %4926 = vmatprep.subr.mxu0 %v5789_v1 }
 0x4e5   :  { %4927 = vmatpush3.msra.mxu0 %v5901_v8 }
 0x4e6   :  { %4928 = vmatprep.subr.mxu0 %v5789_v1 }
 0x4e7   :  { %4929 = vmatpush3.msra.mxu0 %v5908_v9 }
 0x4e8   :  { %4930 = vmatprep.subr.mxu0 %v5789_v1 }
 0x4e9   :  { %4931 = vmatpush3.msra.mxu0 %v5915_v10 }
 0x4ea   :  { %4932 = vmatprep.subr.mxu0 %v5789_v1 }
 0x4eb   :  { %4933 = vmatpush3.msra.mxu0 %v5922_v11 }
 0x4ec   :  { %4934 = vmatprep.subr.mxu0 %v5789_v1 }
 0x4ed   :  { %4935 = vmatpush3.msra.mxu0 %v5929_v12 }
 0x4ee   :  { %4936 = vmatprep.subr.mxu0 %v5789_v1 }
 0x4ef   :  { %4937 = vmatpush3.msra.mxu0 %v5936_v13 }
 0x4f0   :  { %4971 = vmatprep.subr.mxu0 %v5789_v1 }
 0x5a0   :  { %v578_v49 = vpop.f32.mrf.mxu0 }
 0x5a1   :  { %v579_v50 = vadd.f32 %v5945_v14, %v578_v49 }
 0x5a2   :  { %v4921_v51 = vpop.f32.mrf.mxu0 }
 0x5a3   :  { %5674 = vtanh.f32 %v579_v50  ;;  %v1278_v51 = vstv %s1272_s10  ;;  %s6923_s10 = sld [smem:[#allocation3 + $0x7]] }
 0x5b0   :  { %v5675_v52 = vpop.eup %5674 }
 0x5b1   :  { %4939 = vmatmul.mubr.msk.f32.vlgmr.msra.gmra.mxu0 %vm132_vm2, %v5675_v52 }
 0x5b2   :  { %4972 = vmatpush3.msra.mxu0 %v5836_v0  ;;  %4979 = vmatprep.mubr.msk.f32.mxu0 %vm5790_vm0, %v5789_v1 }
 0x5b3   :  { %4973 = vmatprep.subr.mxu0 %v5789_v1 }
 0x5b4   :  { %4974 = vmatpush3.msra.mxu0 %v5842_v2 }
 0x5b5   :  { %4975 = vmatprep.subr.mxu0 %v5789_v1 }
 0x5b6   :  { %4976 = vmatpush3.msra.mxu0 %v5859_v4 }
 0x5b7   :  { %4977 = vmatprep.subr.mxu0 %v5789_v1 }
 0x5b8   :  { %4978 = vmatpush3.msra.mxu0 %v5868_v5 }
 0x5b9   :  { %4982 = vmatprep.subr.mxu0 %v5789_v1 }
 0x671   :  { %v652_v53 = vpop.f32.mrf.mxu0 }
 0x672   :  { %v653_v54 = vadd.f32 %v5965_v19, %v652_v53 }
 0x673   :  { %v4940_v56 = vpop.f32.mrf.mxu0 }
 0x674   :  { %v663_v57 = vadd.f32 %v662_v48, %v653_v54 }
 0x676   :  { %v665_v58 = vmul.f32 %v664_v55, %v663_v57 }
 0x678   :  { %v6074_v59 = vadd.f32 %v665_v58, %v5849_v3 }
 0x67a   :  { %668 = vrot.lane.b32.xlu0 %v6074_v59, %s5791_s8  ;;  %4950 = vmatmul.mubr.msk.f32.vlgmr.msra.gmra.mxu1 %vm55_vm1, %v6074_v59 }
 0x67b   :  { %4953 = vmatpush3.msra.mxu1 %v5889_v6  ;;  %4968 = vmatprep.mubr.msk.f32.mxu1 %vm5790_vm0, %v5789_v1 }
 0x67c   :  { %4954 = vmatprep.subr.mxu1 %v5789_v1 }
 0x67d   :  { %4955 = vmatpush3.msra.mxu1 %v5896_v7 }
 0x67e   :  { %4956 = vmatprep.subr.mxu1 %v5789_v1 }
 0x67f   :  { %4957 = vmatpush3.msra.mxu1 %v5901_v8 }
 0x680   :  { %4958 = vmatprep.subr.mxu1 %v5789_v1 }
 0x681   :  { %4959 = vmatpush3.msra.mxu1 %v5908_v9 }
 0x682   :  { %4960 = vmatprep.subr.mxu1 %v5789_v1 }
 0x683   :  { %4961 = vmatpush3.msra.mxu1 %v5915_v10 }
 0x684   :  { %4962 = vmatprep.subr.mxu1 %v5789_v1 }
 0x685   :  { %4963 = vmatpush3.msra.mxu1 %v5922_v11 }
 0x686   :  { %4964 = vmatprep.subr.mxu1 %v5789_v1 }
 0x687   :  { %4965 = vmatpush3.msra.mxu1 %v5929_v12 }
 0x688   :  { %4966 = vmatprep.subr.mxu1 %v5789_v1 }
 0x689   :  { %4967 = vmatpush3.msra.mxu1 %v5936_v13 }
 0x68a   :  { %5001 = vmatprep.subr.mxu1 %v5789_v1 }
 0x6ec   :  { %v669_v60 = vpop.permute.xlu0 %668 }
 0x6ed   :  { %672 = vst.msk [vmem:[#allocation4] sm:$0xff] %vm671_vm3, %v669_v60 }
 0x73a   :  { %v742_v61 = vpop.f32.mrf.mxu1 }
 0x73b   :  { %v743_v62 = vadd.f32 %v5945_v14, %v742_v61 }
 0x73c   :  { %v4951_v63 = vpop.f32.mrf.mxu1 }
 0x73d   :  { %5676 = vtanh.f32 %v743_v62  ;;  %v1435_v62 = vstv %s1434_s13 }
 0x74a   :  { %v5677_v3 = vpop.eup %5676 }
 0x74b   :  { %4969 = vmatmul.mubr.msk.f32.vlgmr.msra.gmra.mxu1 %vm132_vm2, %v5677_v3 }
 0x74c   :  { %5002 = vmatpush3.msra.mxu1 %v5836_v0  ;;  %5009 = vmatprep.mubr.msk.f32.mxu1 %vm5790_vm0, %v5789_v1 }
 0x74d   :  { %5003 = vmatprep.subr.mxu1 %v5789_v1 }
 0x74e   :  { %5004 = vmatpush3.msra.mxu1 %v5842_v2 }
 0x74f   :  { %5005 = vmatprep.subr.mxu1 %v5789_v1 }
 0x750   :  { %5006 = vmatpush3.msra.mxu1 %v5859_v4 }
 0x751   :  { %5007 = vmatprep.subr.mxu1 %v5789_v1 }
 0x752   :  { %5008 = vmatpush3.msra.mxu1 %v5868_v5 }
 0x753   :  { %5012 = vmatprep.subr.mxu1 %v5789_v1 }
 0x80b   :  { %v816_v15 = vpop.f32.mrf.mxu1 }
 0x80c   :  { %v6115_v17 = vadd.f32 %v5965_v19, %v816_v15 }
 0x80d   :  { %v4970_v18 = vpop.f32.mrf.mxu1 }
 0x80e   :  { %v822_v20 = vmul.f32 %v821_v16, %v6115_v17 }
 0x810   :  { %v823_v21 = vadd.f32 %v822_v20, %v6074_v59 }
 0x812   :  { %4980 = vmatmul.mubr.msk.f32.vlgmr.msra.gmra.mxu0 %vm55_vm1, %v823_v21 }
 0x813   :  { %4983 = vmatpush3.msra.mxu0 %v5889_v6  ;;  %4998 = vmatprep.mubr.msk.f32.mxu0 %vm5790_vm0, %v5789_v1 }
 0x814   :  { %4984 = vmatprep.subr.mxu0 %v5789_v1 }
 0x815   :  { %4985 = vmatpush3.msra.mxu0 %v5896_v7 }
 0x816   :  { %4986 = vmatprep.subr.mxu0 %v5789_v1 }
 0x817   :  { %4987 = vmatpush3.msra.mxu0 %v5901_v8 }
 0x818   :  { %4988 = vmatprep.subr.mxu0 %v5789_v1 }
 0x819   :  { %4989 = vmatpush3.msra.mxu0 %v5908_v9 }
 0x81a   :  { %4990 = vmatprep.subr.mxu0 %v5789_v1 }
 0x81b   :  { %4991 = vmatpush3.msra.mxu0 %v5915_v10 }
 0x81c   :  { %4992 = vmatprep.subr.mxu0 %v5789_v1 }
 0x81d   :  { %4993 = vmatpush3.msra.mxu0 %v5922_v11 }
 0x81e   :  { %4994 = vmatprep.subr.mxu0 %v5789_v1 }
 0x81f   :  { %4995 = vmatpush3.msra.mxu0 %v5929_v12 }
 0x820   :  { %4996 = vmatprep.subr.mxu0 %v5789_v1 }
 0x821   :  { %4997 = vmatpush3.msra.mxu0 %v5936_v13 }
 0x822   :  { %5031 = vmatprep.subr.mxu0 %v5789_v1 }
 0x8d2   :  { %v893_v22 = vpop.f32.mrf.mxu0 }
 0x8d3   :  { %v894_v23 = vadd.f32 %v5945_v14, %v893_v22 }
 0x8d4   :  { %v4981_v24 = vpop.f32.mrf.mxu0 }
 0x8d5   :  { %5678 = vtanh.f32 %v894_v23 }
 0x8e2   :  { %v5679_v25 = vpop.eup %5678 }
 0x8e3   :  { %4999 = vmatmul.mubr.msk.f32.vlgmr.msra.gmra.mxu0 %vm132_vm2, %v5679_v25 }
 0x8e4   :  { %5032 = vmatpush3.msra.mxu0 %v5836_v0  ;;  %5039 = vmatprep.mubr.msk.f32.mxu0 %vm5790_vm0, %v5789_v1 }
 0x8e5   :  { %5033 = vmatprep.subr.mxu0 %v5789_v1 }
 0x8e6   :  { %5034 = vmatpush3.msra.mxu0 %v5842_v2 }
 0x8e7   :  { %5035 = vmatprep.subr.mxu0 %v5789_v1 }
 0x8e8   :  { %5036 = vmatpush3.msra.mxu0 %v5859_v4 }
 0x8e9   :  { %5037 = vmatprep.subr.mxu0 %v5789_v1 }
 0x8ea   :  { %5038 = vmatpush3.msra.mxu0 %v5868_v5 }
 0x8eb   :  { %5042 = vmatprep.subr.mxu0 %v5789_v1 }
 0x9a3   :  { %v967_v26 = vpop.f32.mrf.mxu0 }
 0x9a4   :  { %v968_v27 = vadd.f32 %v5965_v19, %v967_v26 }
 0x9a5   :  { %v5000_v28 = vpop.f32.mrf.mxu0 }
 0x9a6   :  { %v971_v29 = vmul.f32 %v968_v27, %v821_v16  ;;  %v1273_v35 = vmul.f32 2.0, %v968_v27 }
 0x9a8   :  { %v972_v30 = vadd.f32 %v971_v29, %v6074_v59  ;;  %v1274_v40 = vadd.f32 %v1273_v35, %v6115_v17 }
 0x9aa   :  { %5010 = vmatmul.mubr.msk.f32.vlgmr.msra.gmra.mxu1 %vm55_vm1, %v972_v30 }
 0x9ab   :  { %5013 = vmatpush3.msra.mxu1 %v5889_v6  ;;  %5028 = vmatprep.mubr.msk.f32.mxu1 %vm5790_vm0, %v5789_v1 }
 0x9ac   :  { %5014 = vmatprep.subr.mxu1 %v5789_v1 }
 0x9ad   :  { %5015 = vmatpush3.msra.mxu1 %v5896_v7 }
 0x9ae   :  { %5016 = vmatprep.subr.mxu1 %v5789_v1 }
 0x9af   :  { %5017 = vmatpush3.msra.mxu1 %v5901_v8 }
 0x9b0   :  { %5018 = vmatprep.subr.mxu1 %v5789_v1 }
 0x9b1   :  { %5019 = vmatpush3.msra.mxu1 %v5908_v9 }
 0x9b2   :  { %5020 = vmatprep.subr.mxu1 %v5789_v1 }
 0x9b3   :  { %5021 = vmatpush3.msra.mxu1 %v5915_v10 }
 0x9b4   :  { %5022 = vmatprep.subr.mxu1 %v5789_v1 }
 0x9b5   :  { %5023 = vmatpush3.msra.mxu1 %v5922_v11 }
 0x9b6   :  { %5024 = vmatprep.subr.mxu1 %v5789_v1 }
 0x9b7   :  { %5025 = vmatpush3.msra.mxu1 %v5929_v12 }
 0x9b8   :  { %5026 = vmatprep.subr.mxu1 %v5789_v1 }
 0x9b9   :  { %5027 = vmatpush3.msra.mxu1 %v5936_v13 }
 0x9ba   :  { %5061 = vmatprep.subr.mxu1 %v5789_v1 }
 0xa6a   :  { %v1042_v31 = vpop.f32.mrf.mxu1 }
 0xa6b   :  { %v1043_v32 = vadd.f32 %v5945_v14, %v1042_v31 }
 0xa6c   :  { %v5011_v33 = vpop.f32.mrf.mxu1 }
 0xa6d   :  { %5680 = vtanh.f32 %v1043_v32 }
 0xa7a   :  { %v5681_v34 = vpop.eup %5680 }
 0xa7b   :  { %5029 = vmatmul.mubr.msk.f32.vlgmr.msra.gmra.mxu1 %vm132_vm2, %v5681_v34 }
 0xa7c   :  { %5062 = vmatpush3.msra.mxu1 %v5836_v0  ;;  %5069 = vmatprep.mubr.msk.f32.mxu1 %vm5790_vm0, %v5789_v1 }
 0xa7d   :  { %5063 = vmatprep.subr.mxu1 %v5789_v1 }
 0xa7e   :  { %5064 = vmatpush3.msra.mxu1 %v5842_v2 }
 0xa7f   :  { %5065 = vmatprep.subr.mxu1 %v5789_v1 }
 0xa80   :  { %5066 = vmatpush3.msra.mxu1 %v5859_v4 }
 0xa81   :  { %5067 = vmatprep.subr.mxu1 %v5789_v1 }
 0xa82   :  { %5068 = vmatpush3.msra.mxu1 %v5868_v5 }
 0xa83   :  { %5072 = vmatprep.subr.mxu1 %v5789_v1 }
 0xb3b   :  { %v1116_v36 = vpop.f32.mrf.mxu1 }
 0xb3c   :  { %v1117_v38 = vadd.f32 %v5965_v19, %v1116_v36 }
 0xb3d   :  { %v5030_v39 = vpop.f32.mrf.mxu1 }
 0xb3e   :  { %v1121_v41 = vmul.f32 %v1120_v37, %v1117_v38  ;;  %v1275_v42 = vmul.f32 2.0, %v1117_v38 }
 0xb40   :  { %v1122_v43 = vadd.f32 %v1121_v41, %v6074_v59  ;;  %v1276_v44 = vadd.f32 %v1275_v42, %v1274_v40  ;;  %v6358_v41 = vld [vmem:[%s7024_s2 + $0x18] sm:$0xff]  ;;  %v6367_v42 = vld [vmem:[%s7024_s2 + $0x10] sm:$0xff] }
 0xb42   :  { %5040 = vmatmul.mubr.msk.f32.vlgmr.msra.gmra.mxu0 %vm55_vm1, %v1122_v43  ;;  %v6374_v43 = vld [vmem:[%s7024_s2 + $0x8] sm:$0xff] }
 0xb43   :  { %5043 = vmatpush3.msra.mxu0 %v5889_v6  ;;  %5058 = vmatprep.mubr.msk.f32.mxu0 %vm5790_vm0, %v5789_v1 }
 0xb44   :  { %5044 = vmatprep.subr.mxu0 %v5789_v1 }
 0xb45   :  { %5045 = vmatpush3.msra.mxu0 %v5896_v7 }
 0xb46   :  { %5046 = vmatprep.subr.mxu0 %v5789_v1 }
 0xb47   :  { %5047 = vmatpush3.msra.mxu0 %v5901_v8 }
 0xb48   :  { %5048 = vmatprep.subr.mxu0 %v5789_v1 }
 0xb49   :  { %5049 = vmatpush3.msra.mxu0 %v5908_v9 }
 0xb4a   :  { %5050 = vmatprep.subr.mxu0 %v5789_v1 }
 0xb4b   :  { %5051 = vmatpush3.msra.mxu0 %v5915_v10 }
 0xb4c   :  { %5052 = vmatprep.subr.mxu0 %v5789_v1 }
 0xb4d   :  { %5053 = vmatpush3.msra.mxu0 %v5922_v11 }
 0xb4e   :  { %5054 = vmatprep.subr.mxu0 %v5789_v1 }
 0xb4f   :  { %5055 = vmatpush3.msra.mxu0 %v5929_v12 }
 0xb50   :  { %5056 = vmatprep.subr.mxu0 %v5789_v1 }
 0xb51   :  { %5057 = vmatpush3.msra.mxu0 %v5936_v13 }
 0xb52   :  { %5091 = vmatprep.subr.mxu0 %v5789_v1 }
 0xc02   :  { %v1192_v45 = vpop.f32.mrf.mxu0 }
 0xc03   :  { %v1193_v46 = vadd.f32 %v5945_v14, %v1192_v45 }
 0xc04   :  { %v5041_v47 = vpop.f32.mrf.mxu0 }
 0xc05   :  { %5682 = vtanh.f32 %v1193_v46  ;;  %v1892_v47 = vstv %s1886_s22  ;;  %s6618_s22 = sld [smem:[#allocation3 + $0x5]] }
 0xc12   :  { %v5683_v48 = vpop.eup %5682 }
 0xc13   :  { %5059 = vmatmul.mubr.msk.f32.vlgmr.msra.gmra.mxu0 %vm132_vm2, %v5683_v48 }
 0xc14   :  { %5092 = vmatpush3.msra.mxu0 %v5836_v0  ;;  %5099 = vmatprep.mubr.msk.f32.mxu0 %vm5790_vm0, %v5789_v1 }
 0xc15   :  { %5093 = vmatprep.subr.mxu0 %v5789_v1 }
 0xc16   :  { %5094 = vmatpush3.msra.mxu0 %v5842_v2 }
 0xc17   :  { %5095 = vmatprep.subr.mxu0 %v5789_v1 }
 0xc18   :  { %5096 = vmatpush3.msra.mxu0 %v5859_v4 }
 0xc19   :  { %5097 = vmatprep.subr.mxu0 %v5789_v1 }
 0xc1a   :  { %5098 = vmatpush3.msra.mxu0 %v5868_v5 }
 0xc1b   :  { %5102 = vmatprep.subr.mxu0 %v5789_v1 }
 0xcd3   :  { %v1266_v49 = vpop.f32.mrf.mxu0 }
 0xcd4   :  { %v1267_v50 = vadd.f32 %v5965_v19, %v1266_v49 }
 0xcd5   :  { %v5060_v52 = vpop.f32.mrf.mxu0 }
 0xcd6   :  { %v1277_v53 = vadd.f32 %v1276_v44, %v1267_v50  ;;  %v6381_v44 = vld [vmem:[%s7024_s2] sm:$0xff] }
 0xcd8   :  { %v1279_v54 = vmul.f32 %v1278_v51, %v1277_v53  ;;  %v6434_v53 = vld [vmem:[%s7026_s4 + $0x38] sm:$0xff] }
 0xcda   :  { %v6221_v55 = vadd.f32 %v1279_v54, %v6074_v59  ;;  %v6450_v54 = vld [vmem:[%s7026_s4 + $0x28] sm:$0xff] }
 0xcdc   :  { %1282 = vrot.lane.b32.xlu1 %v6221_v55, %s5792_s11  ;;  %5070 = vmatmul.mubr.msk.f32.vlgmr.msra.gmra.mxu1 %vm55_vm1, %v6221_v55 }
 0xcdd   :  { %5073 = vmatpush3.msra.mxu1 %v5889_v6  ;;  %5088 = vmatprep.mubr.msk.f32.mxu1 %vm5790_vm0, %v5789_v1 }
 0xcde   :  { %5074 = vmatprep.subr.mxu1 %v5789_v1 }
 0xcdf   :  { %5075 = vmatpush3.msra.mxu1 %v5896_v7 }
 0xce0   :  { %5076 = vmatprep.subr.mxu1 %v5789_v1 }
 0xce1   :  { %5077 = vmatpush3.msra.mxu1 %v5901_v8 }
 0xce2   :  { %5078 = vmatprep.subr.mxu1 %v5789_v1 }
 0xce3   :  { %5079 = vmatpush3.msra.mxu1 %v5908_v9 }
 0xce4   :  { %5080 = vmatprep.subr.mxu1 %v5789_v1 }
 0xce5   :  { %5081 = vmatpush3.msra.mxu1 %v5915_v10 }
 0xce6   :  { %5082 = vmatprep.subr.mxu1 %v5789_v1 }
 0xce7   :  { %5083 = vmatpush3.msra.mxu1 %v5922_v11 }
 0xce8   :  { %5084 = vmatprep.subr.mxu1 %v5789_v1 }
 0xce9   :  { %5085 = vmatpush3.msra.mxu1 %v5929_v12 }
 0xcea   :  { %5086 = vmatprep.subr.mxu1 %v5789_v1 }
 0xceb   :  { %5087 = vmatpush3.msra.mxu1 %v5936_v13 }
 0xcec   :  { %5121 = vmatprep.subr.mxu1 %v5789_v1 }
 0xd4e   :  { %v1283_v56 = vpop.permute.xlu1 %1282 }
 0xd4f   :  { %1286 = vst.msk [vmem:[#allocation4] sm:$0xff] %vm1285_vm4, %v1283_v56  ;;  %v6464_v56 = vld [vmem:[%s7026_s4 + $0x18] sm:$0xff] }
 0xd9c   :  { %v1356_v57 = vpop.f32.mrf.mxu1 }
 0xd9d   :  { %v1357_v58 = vadd.f32 %v5945_v14, %v1356_v57  ;;  %v6471_v57 = vld [vmem:[%s7026_s4 + $0x10] sm:$0xff] }
 0xd9e   :  { %v5071_v59 = vpop.f32.mrf.mxu1 }
 0xd9f   :  { %5684 = vtanh.f32 %v1357_v58  ;;  %v6478_v58 = vld [vmem:[%s7026_s4 + $0x8] sm:$0xff]  ;;  %v6485_v59 = vld [vmem:[%s7026_s4] sm:$0xff] }
 0xdac   :  { %v5685_v60 = vpop.eup %5684 }
 0xdad   :  { %5089 = vmatmul.mubr.msk.f32.vlgmr.msra.gmra.mxu1 %vm132_vm2, %v5685_v60 }
 0xdae   :  { %5122 = vmatpush3.msra.mxu1 %v5836_v0  ;;  %5129 = vmatprep.mubr.msk.f32.mxu1 %vm5790_vm0, %v5789_v1 }
 0xdaf   :  { %5123 = vmatprep.subr.mxu1 %v5789_v1 }
 0xdb0   :  { %5124 = vmatpush3.msra.mxu1 %v5842_v2 }
 0xdb1   :  { %5125 = vmatprep.subr.mxu1 %v5789_v1 }
 0xdb2   :  { %5126 = vmatpush3.msra.mxu1 %v5859_v4 }
 0xdb3   :  { %5127 = vmatprep.subr.mxu1 %v5789_v1 }
 0xdb4   :  { %5128 = vmatpush3.msra.mxu1 %v5868_v5 }
 0xdb5   :  { %5132 = vmatprep.subr.mxu1 %v5789_v1 }
 0xe6d   :  { %v1430_v61 = vpop.f32.mrf.mxu1 }
 0xe6e   :  { %v6262_v63 = vadd.f32 %v5965_v19, %v1430_v61  ;;  %v6492_v61 = vld [vmem:[%s7025_s3] ss:$0 sm:$0xff] }
 0xe6f   :  { %v5090_v3 = vpop.f32.mrf.mxu1 }
 0xe70   :  { %v1436_v15 = vmul.f32 %v1435_v62, %v6262_v63 }
 0xe72   :  { %v1437_v16 = vadd.f32 %v1436_v15, %v6221_v55 }
 0xe74   :  { %5100 = vmatmul.mubr.msk.f32.vlgmr.msra.gmra.mxu0 %vm55_vm1, %v1437_v16  ;;  %v6509_v16 = vld [vmem:[%s7027_s5] ss:$0 sm:$0xff] }
 0xe75   :  { %5103 = vmatpush3.msra.mxu0 %v5889_v6  ;;  %5118 = vmatprep.mubr.msk.f32.mxu0 %vm5790_vm0, %v5789_v1 }
 0xe76   :  { %5104 = vmatprep.subr.mxu0 %v5789_v1 }
 0xe77   :  { %5105 = vmatpush3.msra.mxu0 %v5896_v7 }
 0xe78   :  { %5106 = vmatprep.subr.mxu0 %v5789_v1 }
 0xe79   :  { %5107 = vmatpush3.msra.mxu0 %v5901_v8 }
 0xe7a   :  { %5108 = vmatprep.subr.mxu0 %v5789_v1 }
 0xe7b   :  { %5109 = vmatpush3.msra.mxu0 %v5908_v9 }
 0xe7c   :  { %5110 = vmatprep.subr.mxu0 %v5789_v1 }
 0xe7d   :  { %5111 = vmatpush3.msra.mxu0 %v5915_v10 }
 0xe7e   :  { %5112 = vmatprep.subr.mxu0 %v5789_v1 }
 0xe7f   :  { %5113 = vmatpush3.msra.mxu0 %v5922_v11 }
 0xe80   :  { %5114 = vmatprep.subr.mxu0 %v5789_v1 }
 0xe81   :  { %5115 = vmatpush3.msra.mxu0 %v5929_v12 }
 0xe82   :  { %5116 = vmatprep.subr.mxu0 %v5789_v1 }
 0xe83   :  { %5117 = vmatpush3.msra.mxu0 %v5936_v13 }
 0xe84   :  { %5151 = vmatprep.subr.mxu0 %v5789_v1 }
 0xf34   :  { %v1507_v17 = vpop.f32.mrf.mxu0 }
 0xf35   :  { %v1508_v18 = vadd.f32 %v5945_v14, %v1507_v17 }
 0xf36   :  { %v5101_v20 = vpop.f32.mrf.mxu0 }
 0xf37   :  { %5686 = vtanh.f32 %v1508_v18 }
 0xf44   :  { %v5687_v21 = vpop.eup %5686 }
 0xf45   :  { %5119 = vmatmul.mubr.msk.f32.vlgmr.msra.gmra.mxu0 %vm132_vm2, %v5687_v21 }
 0xf46   :  { %5152 = vmatpush3.msra.mxu0 %v5836_v0  ;;  %5159 = vmatprep.mubr.msk.f32.mxu0 %vm5790_vm0, %v5789_v1 }
 0xf47   :  { %5153 = vmatprep.subr.mxu0 %v5789_v1 }
 0xf48   :  { %5154 = vmatpush3.msra.mxu0 %v5842_v2 }
 0xf49   :  { %5155 = vmatprep.subr.mxu0 %v5789_v1 }
 0xf4a   :  { %5156 = vmatpush3.msra.mxu0 %v5859_v4 }
 0xf4b   :  { %5157 = vmatprep.subr.mxu0 %v5789_v1 }
 0xf4c   :  { %5158 = vmatpush3.msra.mxu0 %v5868_v5 }
 0xf4d   :  { %5162 = vmatprep.subr.mxu0 %v5789_v1 }
0x1005   :  { %v1581_v22 = vpop.f32.mrf.mxu0 }
0x1006   :  { %v1582_v23 = vadd.f32 %v5965_v19, %v1581_v22 }
0x1007   :  { %v5120_v24 = vpop.f32.mrf.mxu0 }
0x1008   :  { %v1585_v25 = vmul.f32 %v1582_v23, %v1435_v62  ;;  %v1887_v31 = vmul.f32 2.0, %v1582_v23 }
0x100a   :  { %v1586_v26 = vadd.f32 %v1585_v25, %v6221_v55  ;;  %v1888_v35 = vadd.f32 %v1887_v31, %v6262_v63 }
0x100c   :  { %5130 = vmatmul.mubr.msk.f32.vlgmr.msra.gmra.mxu1 %vm55_vm1, %v1586_v26 }
0x100d   :  { %5133 = vmatpush3.msra.mxu1 %v5889_v6  ;;  %5148 = vmatprep.mubr.msk.f32.mxu1 %vm5790_vm0, %v5789_v1 }
0x100e   :  { %5134 = vmatprep.subr.mxu1 %v5789_v1 }
0x100f   :  { %5135 = vmatpush3.msra.mxu1 %v5896_v7 }
0x1010   :  { %5136 = vmatprep.subr.mxu1 %v5789_v1 }
0x1011   :  { %5137 = vmatpush3.msra.mxu1 %v5901_v8 }
0x1012   :  { %5138 = vmatprep.subr.mxu1 %v5789_v1 }
0x1013   :  { %5139 = vmatpush3.msra.mxu1 %v5908_v9 }
0x1014   :  { %5140 = vmatprep.subr.mxu1 %v5789_v1 }
0x1015   :  { %5141 = vmatpush3.msra.mxu1 %v5915_v10 }
0x1016   :  { %5142 = vmatprep.subr.mxu1 %v5789_v1 }
0x1017   :  { %5143 = vmatpush3.msra.mxu1 %v5922_v11 }
0x1018   :  { %5144 = vmatprep.subr.mxu1 %v5789_v1 }
0x1019   :  { %5145 = vmatpush3.msra.mxu1 %v5929_v12 }
0x101a   :  { %5146 = vmatprep.subr.mxu1 %v5789_v1 }
0x101b   :  { %5147 = vmatpush3.msra.mxu1 %v5936_v13 }
0x101c   :  { %5181 = vmatprep.subr.mxu1 %v5789_v1 }
0x10cc   :  { %v1656_v27 = vpop.f32.mrf.mxu1 }
0x10cd   :  { %v1657_v28 = vadd.f32 %v5945_v14, %v1656_v27 }
0x10ce   :  { %v5131_v29 = vpop.f32.mrf.mxu1 }
0x10cf   :  { %5688 = vtanh.f32 %v1657_v28  ;;  %v2348_v28 = vstv %s6422_s23  ;;  %s2658_s23 = smul.f32 0.5, %s6618_s22 }
0x10dc   :  { %v5689_v30 = vpop.eup %5688 }
0x10dd   :  { %5149 = vmatmul.mubr.msk.f32.vlgmr.msra.gmra.mxu1 %vm132_vm2, %v5689_v30 }
0x10de   :  { %5182 = vmatpush3.msra.mxu1 %v5836_v0  ;;  %5189 = vmatprep.mubr.msk.f32.mxu1 %vm5790_vm0, %v5789_v1  ;;  %v1734_v0 = vstv %s6258_s12  ;;  %s3884_s12 = smul.f32 0.5, %s6923_s10 }
0x10df   :  { %5183 = vmatprep.subr.mxu1 %v5789_v1 }
0x10e0   :  { %5184 = vmatpush3.msra.mxu1 %v5842_v2 }
0x10e1   :  { %5185 = vmatprep.subr.mxu1 %v5789_v1 }
0x10e2   :  { %5186 = vmatpush3.msra.mxu1 %v5859_v4 }
0x10e3   :  { %5187 = vmatprep.subr.mxu1 %v5789_v1 }
0x10e4   :  { %5188 = vmatpush3.msra.mxu1 %v5868_v5 }
0x10e5   :  { %5192 = vmatprep.subr.mxu1 %v5789_v1 }
0x119d   :  { %v1730_v32 = vpop.f32.mrf.mxu1 }
0x119e   :  { %v1731_v33 = vadd.f32 %v5965_v19, %v1730_v32 }
0x119f   :  { %v5150_v34 = vpop.f32.mrf.mxu1 }
0x11a0   :  { %v1735_v36 = vmul.f32 %v1734_v0, %v1731_v33  ;;  %v1889_v2 = vmul.f32 2.0, %v1731_v33 }
0x11a2   :  { %v1736_v37 = vadd.f32 %v1735_v36, %v6221_v55  ;;  %v1890_v38 = vadd.f32 %v1889_v2, %v1888_v35 }
0x11a4   :  { %5160 = vmatmul.mubr.msk.f32.vlgmr.msra.gmra.mxu0 %vm55_vm1, %v1736_v37 }
0x11a5   :  { %5163 = vmatpush3.msra.mxu0 %v5889_v6  ;;  %5178 = vmatprep.mubr.msk.f32.mxu0 %vm5790_vm0, %v5789_v1 }
0x11a6   :  { %5164 = vmatprep.subr.mxu0 %v5789_v1 }
0x11a7   :  { %5165 = vmatpush3.msra.mxu0 %v5896_v7 }
0x11a8   :  { %5166 = vmatprep.subr.mxu0 %v5789_v1 }
0x11a9   :  { %5167 = vmatpush3.msra.mxu0 %v5901_v8 }
0x11aa   :  { %5168 = vmatprep.subr.mxu0 %v5789_v1 }
0x11ab   :  { %5169 = vmatpush3.msra.mxu0 %v5908_v9 }
0x11ac   :  { %5170 = vmatprep.subr.mxu0 %v5789_v1 }
0x11ad   :  { %5171 = vmatpush3.msra.mxu0 %v5915_v10 }
0x11ae   :  { %5172 = vmatprep.subr.mxu0 %v5789_v1 }
0x11af   :  { %5173 = vmatpush3.msra.mxu0 %v5922_v11 }
0x11b0   :  { %5174 = vmatprep.subr.mxu0 %v5789_v1 }
0x11b1   :  { %5175 = vmatpush3.msra.mxu0 %v5929_v12 }
0x11b2   :  { %5176 = vmatprep.subr.mxu0 %v5789_v1 }
0x11b3   :  { %5177 = vmatpush3.msra.mxu0 %v5936_v13 }
0x11b4   :  { %5211 = vmatprep.subr.mxu0 %v5789_v1 }
0x1264   :  { %v1806_v4 = vpop.f32.mrf.mxu0 }
0x1265   :  { %v1807_v5 = vadd.f32 %v5945_v14, %v1806_v4 }
0x1266   :  { %v5161_v39 = vpop.f32.mrf.mxu0 }
0x1267   :  { %5690 = vtanh.f32 %v1807_v5  ;;  %v2506_v5 = vstv %s2500_s21 }
0x1274   :  { %v5691_v40 = vpop.eup %5690 }
0x1275   :  { %5179 = vmatmul.mubr.msk.f32.vlgmr.msra.gmra.mxu0 %vm132_vm2, %v5691_v40 }
0x1276   :  { %5212 = vmatpush3.msra.mxu0 %v6358_v41  ;;  %5219 = vmatprep.mubr.msk.f32.mxu0 %vm5790_vm0, %v5789_v1 }
0x1277   :  { %5213 = vmatprep.subr.mxu0 %v5789_v1 }
0x1278   :  { %5214 = vmatpush3.msra.mxu0 %v6367_v42 }
0x1279   :  { %5215 = vmatprep.subr.mxu0 %v5789_v1 }
0x127a   :  { %5216 = vmatpush3.msra.mxu0 %v6374_v43 }
0x127b   :  { %5217 = vmatprep.subr.mxu0 %v5789_v1 }
0x127c   :  { %5218 = vmatpush3.msra.mxu0 %v6381_v44 }
0x127d   :  { %5222 = vmatprep.subr.mxu0 %v5789_v1 }
0x1335   :  { %v1880_v45 = vpop.f32.mrf.mxu0 }
0x1336   :  { %v1881_v46 = vadd.f32 %v5965_v19, %v1880_v45 }
0x1337   :  { %v5180_v48 = vpop.f32.mrf.mxu0 }
0x1338   :  { %v1891_v49 = vadd.f32 %v1890_v38, %v1881_v46 }
0x133a   :  { %v1893_v50 = vmul.f32 %v1892_v47, %v1891_v49 }
0x133c   :  { %v6388_v51 = vadd.f32 %v1893_v50, %v6221_v55  ;;  %v6457_v55 = vld [vmem:[%s7026_s4 + $0x20] sm:$0xff] }
0x133e   :  { %5190 = vmatmul.mubr.msk.f32.vlgmr.msra.gmra.mxu1 %vm55_vm1, %v6388_v51 }
0x133f   :  { %5193 = vmatpush3.msra.mxu1 %v5889_v6  ;;  %5208 = vmatprep.mubr.msk.f32.mxu1 %vm5790_vm0, %v5789_v1 }
0x1340   :  { %5194 = vmatprep.subr.mxu1 %v5789_v1 }
0x1341   :  { %5195 = vmatpush3.msra.mxu1 %v5896_v7 }
0x1342   :  { %5196 = vmatprep.subr.mxu1 %v5789_v1 }
0x1343   :  { %5197 = vmatpush3.msra.mxu1 %v5901_v8 }
0x1344   :  { %5198 = vmatprep.subr.mxu1 %v5789_v1 }
0x1345   :  { %5199 = vmatpush3.msra.mxu1 %v5908_v9 }
0x1346   :  { %5200 = vmatprep.subr.mxu1 %v5789_v1 }
0x1347   :  { %5201 = vmatpush3.msra.mxu1 %v5915_v10 }
0x1348   :  { %5202 = vmatprep.subr.mxu1 %v5789_v1 }
0x1349   :  { %5203 = vmatpush3.msra.mxu1 %v5922_v11  ;;  %v2049_v11 = vstv %s2048_s24  ;;  %s3110_s24 = smul.f32 0.16666667, %s6618_s22 }
0x134a   :  { %5204 = vmatprep.subr.mxu1 %v5789_v1 }
0x134b   :  { %5205 = vmatpush3.msra.mxu1 %v5929_v12 }
0x134c   :  { %5206 = vmatprep.subr.mxu1 %v5789_v1 }
0x134d   :  { %5207 = vmatpush3.msra.mxu1 %v5936_v13 }
0x134e   :  { %5241 = vmatprep.subr.mxu1 %v5789_v1 }
0x13fe   :  { %v1970_v6 = vpop.f32.mrf.mxu1 }
0x13ff   :  { %v1971_v7 = vadd.f32 %v5945_v14, %v1970_v6 }
0x1400   :  { %v5191_v8 = vpop.f32.mrf.mxu1 }
0x1401   :  { %5692 = vtanh.f32 %v1971_v7  ;;  %v2659_v7 = vstv %s2658_s23 }
0x140e   :  { %v5693_v9 = vpop.eup %5692 }
0x140f   :  { %5209 = vmatmul.mubr.msk.f32.vlgmr.msra.gmra.mxu1 %vm132_vm2, %v5693_v9 }
0x1410   :  { %5242 = vmatpush3.msra.mxu1 %v6358_v41  ;;  %5249 = vmatprep.mubr.msk.f32.mxu1 %vm5790_vm0, %v5789_v1 }
0x1411   :  { %5243 = vmatprep.subr.mxu1 %v5789_v1 }
0x1412   :  { %5244 = vmatpush3.msra.mxu1 %v6367_v42 }
0x1413   :  { %5245 = vmatprep.subr.mxu1 %v5789_v1 }
0x1414   :  { %5246 = vmatpush3.msra.mxu1 %v6374_v43 }
0x1415   :  { %5247 = vmatprep.subr.mxu1 %v5789_v1 }
0x1416   :  { %5248 = vmatpush3.msra.mxu1 %v6381_v44 }
0x1417   :  { %5252 = vmatprep.subr.mxu1 %v5789_v1 }
0x14cf   :  { %v2044_v10 = vpop.f32.mrf.mxu1 }
0x14d0   :  { %v6426_v12 = vadd.f32 %v5965_v19, %v2044_v10  ;;  %v6443_v19 = vld [vmem:[%s7026_s4 + $0x30] sm:$0xff] }
0x14d1   :  { %v5210_v13 = vpop.f32.mrf.mxu1 }
0x14d2   :  { %v2050_v14 = vmul.f32 %v2049_v11, %v6426_v12 }
0x14d4   :  { %v2051_v52 = vadd.f32 %v2050_v14, %v6388_v51 }
0x14d6   :  { %5220 = vmatmul.mubr.msk.f32.vlgmr.msra.gmra.mxu0 %vm55_vm1, %v2051_v52 }
0x14d7   :  { %5223 = vmatpush3.msra.mxu0 %v6434_v53  ;;  %5238 = vmatprep.mubr.msk.f32.mxu0 %vm5790_vm0, %v5789_v1 }
0x14d8   :  { %5224 = vmatprep.subr.mxu0 %v5789_v1 }
0x14d9   :  { %5225 = vmatpush3.msra.mxu0 %v6443_v19 }
0x14da   :  { %5226 = vmatprep.subr.mxu0 %v5789_v1 }
0x14db   :  { %5227 = vmatpush3.msra.mxu0 %v6450_v54 }
0x14dc   :  { %5228 = vmatprep.subr.mxu0 %v5789_v1 }
0x14dd   :  { %5229 = vmatpush3.msra.mxu0 %v6457_v55 }
0x14de   :  { %5230 = vmatprep.subr.mxu0 %v5789_v1 }
0x14df   :  { %5231 = vmatpush3.msra.mxu0 %v6464_v56 }
0x14e0   :  { %5232 = vmatprep.subr.mxu0 %v5789_v1 }
0x14e1   :  { %5233 = vmatpush3.msra.mxu0 %v6471_v57 }
0x14e2   :  { %5234 = vmatprep.subr.mxu0 %v5789_v1 }
0x14e3   :  { %5235 = vmatpush3.msra.mxu0 %v6478_v58 }
0x14e4   :  { %5236 = vmatprep.subr.mxu0 %v5789_v1 }
0x14e5   :  { %5237 = vmatpush3.msra.mxu0 %v6485_v59 }
0x14e6   :  { %5271 = vmatprep.subr.mxu0 %v5789_v1 }
0x1596   :  { %v2121_v60 = vpop.f32.mrf.mxu0 }
0x1597   :  { %v2122_v62 = vadd.f32 %v6492_v61, %v2121_v60 }
0x1598   :  { %v5221_v63 = vpop.f32.mrf.mxu0 }
0x1599   :  { %5694 = vtanh.f32 %v2122_v62 }
0x15a6   :  { %v5695_v3 = vpop.eup %5694 }
0x15a7   :  { %5239 = vmatmul.mubr.msk.f32.vlgmr.msra.gmra.mxu0 %vm132_vm2, %v5695_v3 }
0x15a8   :  { %5272 = vmatpush3.msra.mxu0 %v6358_v41  ;;  %5279 = vmatprep.mubr.msk.f32.mxu0 %vm5790_vm0, %v5789_v1 }
0x15a9   :  { %5273 = vmatprep.subr.mxu0 %v5789_v1 }
0x15aa   :  { %5274 = vmatpush3.msra.mxu0 %v6367_v42 }
0x15ab   :  { %5275 = vmatprep.subr.mxu0 %v5789_v1 }
0x15ac   :  { %5276 = vmatpush3.msra.mxu0 %v6374_v43 }
0x15ad   :  { %5277 = vmatprep.subr.mxu0 %v5789_v1 }
0x15ae   :  { %5278 = vmatpush3.msra.mxu0 %v6381_v44 }
0x15af   :  { %5282 = vmatprep.subr.mxu0 %v5789_v1 }
0x1667   :  { %v2195_v15 = vpop.f32.mrf.mxu0 }
0x1668   :  { %v2196_v17 = vadd.f32 %v6509_v16, %v2195_v15 }
0x1669   :  { %v5240_v18 = vpop.f32.mrf.mxu0 }
0x166a   :  { %v2199_v20 = vmul.f32 %v2196_v17, %v2049_v11  ;;  %v2501_v26 = vmul.f32 2.0, %v2196_v17 }
0x166c   :  { %v2200_v21 = vadd.f32 %v2199_v20, %v6388_v51  ;;  %v2502_v31 = vadd.f32 %v2501_v26, %v6426_v12 }
0x166e   :  { %5250 = vmatmul.mubr.msk.f32.vlgmr.msra.gmra.mxu1 %vm55_vm1, %v2200_v21 }
0x166f   :  { %5253 = vmatpush3.msra.mxu1 %v6434_v53  ;;  %5268 = vmatprep.mubr.msk.f32.mxu1 %vm5790_vm0, %v5789_v1 }
0x1670   :  { %5254 = vmatprep.subr.mxu1 %v5789_v1 }
0x1671   :  { %5255 = vmatpush3.msra.mxu1 %v6443_v19 }
0x1672   :  { %5256 = vmatprep.subr.mxu1 %v5789_v1 }
0x1673   :  { %5257 = vmatpush3.msra.mxu1 %v6450_v54 }
0x1674   :  { %5258 = vmatprep.subr.mxu1 %v5789_v1 }
0x1675   :  { %5259 = vmatpush3.msra.mxu1 %v6457_v55 }
0x1676   :  { %5260 = vmatprep.subr.mxu1 %v5789_v1 }
0x1677   :  { %5261 = vmatpush3.msra.mxu1 %v6464_v56 }
0x1678   :  { %5262 = vmatprep.subr.mxu1 %v5789_v1 }
0x1679   :  { %5263 = vmatpush3.msra.mxu1 %v6471_v57 }
0x167a   :  { %5264 = vmatprep.subr.mxu1 %v5789_v1 }
0x167b   :  { %5265 = vmatpush3.msra.mxu1 %v6478_v58 }
0x167c   :  { %5266 = vmatprep.subr.mxu1 %v5789_v1 }
0x167d   :  { %5267 = vmatpush3.msra.mxu1 %v6485_v59 }
0x167e   :  { %5301 = vmatprep.subr.mxu1 %v5789_v1 }
0x172e   :  { %v2270_v22 = vpop.f32.mrf.mxu1 }
0x172f   :  { %v2271_v23 = vadd.f32 %v6492_v61, %v2270_v22 }
0x1730   :  { %v5251_v24 = vpop.f32.mrf.mxu1 }
0x1731   :  { %5696 = vtanh.f32 %v2271_v23  ;;  %v2958_v24 = vstv %s6618_s22 }
0x173e   :  { %v5697_v25 = vpop.eup %5696 }
0x173f   :  { %5269 = vmatmul.mubr.msk.f32.vlgmr.msra.gmra.mxu1 %vm132_vm2, %v5697_v25 }
0x1740   :  { %5302 = vmatpush3.msra.mxu1 %v6358_v41  ;;  %5309 = vmatprep.mubr.msk.f32.mxu1 %vm5790_vm0, %v5789_v1 }
0x1741   :  { %5303 = vmatprep.subr.mxu1 %v5789_v1 }
0x1742   :  { %5304 = vmatpush3.msra.mxu1 %v6367_v42 }
0x1743   :  { %5305 = vmatprep.subr.mxu1 %v5789_v1 }
0x1744   :  { %5306 = vmatpush3.msra.mxu1 %v6374_v43 }
0x1745   :  { %5307 = vmatprep.subr.mxu1 %v5789_v1 }
0x1746   :  { %5308 = vmatpush3.msra.mxu1 %v6381_v44 }
0x1747   :  { %5312 = vmatprep.subr.mxu1 %v5789_v1 }
0x17ff   :  { %v2344_v27 = vpop.f32.mrf.mxu1 }
0x1800   :  { %v2345_v29 = vadd.f32 %v6509_v16, %v2344_v27 }
0x1801   :  { %v5270_v30 = vpop.f32.mrf.mxu1 }
0x1802   :  { %v2349_v32 = vmul.f32 %v2348_v28, %v2345_v29  ;;  %v2503_v0 = vmul.f32 2.0, %v2345_v29 }
0x1804   :  { %v2350_v33 = vadd.f32 %v2349_v32, %v6388_v51  ;;  %v2504_v34 = vadd.f32 %v2503_v0, %v2502_v31 }
0x1806   :  { %5280 = vmatmul.mubr.msk.f32.vlgmr.msra.gmra.mxu0 %vm55_vm1, %v2350_v33 }
0x1807   :  { %5283 = vmatpush3.msra.mxu0 %v6434_v53  ;;  %5298 = vmatprep.mubr.msk.f32.mxu0 %vm5790_vm0, %v5789_v1 }
0x1808   :  { %5284 = vmatprep.subr.mxu0 %v5789_v1 }
0x1809   :  { %5285 = vmatpush3.msra.mxu0 %v6443_v19 }
0x180a   :  { %5286 = vmatprep.subr.mxu0 %v5789_v1 }
0x180b   :  { %5287 = vmatpush3.msra.mxu0 %v6450_v54 }
0x180c   :  { %5288 = vmatprep.subr.mxu0 %v5789_v1 }
0x180d   :  { %5289 = vmatpush3.msra.mxu0 %v6457_v55 }
0x180e   :  { %5290 = vmatprep.subr.mxu0 %v5789_v1 }
0x180f   :  { %5291 = vmatpush3.msra.mxu0 %v6464_v56 }
0x1810   :  { %5292 = vmatprep.subr.mxu0 %v5789_v1 }
0x1811   :  { %5293 = vmatpush3.msra.mxu0 %v6471_v57 }
0x1812   :  { %5294 = vmatprep.subr.mxu0 %v5789_v1 }
0x1813   :  { %5295 = vmatpush3.msra.mxu0 %v6478_v58 }
0x1814   :  { %5296 = vmatprep.subr.mxu0 %v5789_v1 }
0x1815   :  { %5297 = vmatpush3.msra.mxu0 %v6485_v59 }
0x1816   :  { %5331 = vmatprep.subr.mxu0 %v5789_v1 }
0x18c6   :  { %v2420_v35 = vpop.f32.mrf.mxu0 }
0x18c7   :  { %v2421_v36 = vadd.f32 %v6492_v61, %v2420_v35 }
0x18c8   :  { %v5281_v2 = vpop.f32.mrf.mxu0 }
0x18c9   :  { %5698 = vtanh.f32 %v2421_v36  ;;  %v3116_v2 = vstv %s3110_s24 }
0x18d6   :  { %v5699_v37 = vpop.eup %5698 }
0x18d7   :  { %5299 = vmatmul.mubr.msk.f32.vlgmr.msra.gmra.mxu0 %vm132_vm2, %v5699_v37 }
0x18d8   :  { %5332 = vmatpush3.msra.mxu0 %v6358_v41  ;;  %5339 = vmatprep.mubr.msk.f32.mxu0 %vm5790_vm0, %v5789_v1 }
0x18d9   :  { %5333 = vmatprep.subr.mxu0 %v5789_v1 }
0x18da   :  { %5334 = vmatpush3.msra.mxu0 %v6367_v42 }
0x18db   :  { %5335 = vmatprep.subr.mxu0 %v5789_v1 }
0x18dc   :  { %5336 = vmatpush3.msra.mxu0 %v6374_v43 }
0x18dd   :  { %5337 = vmatprep.subr.mxu0 %v5789_v1 }
0x18de   :  { %5338 = vmatpush3.msra.mxu0 %v6381_v44 }
0x18df   :  { %5342 = vmatprep.subr.mxu0 %v5789_v1 }
0x1997   :  { %v2494_v38 = vpop.f32.mrf.mxu0 }
0x1998   :  { %v2495_v4 = vadd.f32 %v6509_v16, %v2494_v38 }
0x1999   :  { %v5300_v39 = vpop.f32.mrf.mxu0 }
0x199a   :  { %v2505_v40 = vadd.f32 %v2504_v34, %v2495_v4 }
0x199c   :  { %v2507_v45 = vmul.f32 %v2506_v5, %v2505_v40 }
0x199e   :  { %v6582_v46 = vadd.f32 %v2507_v45, %v6388_v51 }
0x19a0   :  { %2509 = vst.msk [vmem:[#allocation4 + $0x8] sm:$0xff] %vm55_vm1, %v6582_v46  ;;  %5310 = vmatmul.mubr.msk.f32.vlgmr.msra.gmra.mxu1 %vm55_vm1, %v6582_v46 }
0x19a1   :  { %5313 = vmatpush3.msra.mxu1 %v6434_v53  ;;  %5328 = vmatprep.mubr.msk.f32.mxu1 %vm5790_vm0, %v5789_v1 }
0x19a2   :  { %5314 = vmatprep.subr.mxu1 %v5789_v1 }
0x19a3   :  { %5315 = vmatpush3.msra.mxu1 %v6443_v19 }
0x19a4   :  { %5316 = vmatprep.subr.mxu1 %v5789_v1 }
0x19a5   :  { %5317 = vmatpush3.msra.mxu1 %v6450_v54 }
0x19a6   :  { %5318 = vmatprep.subr.mxu1 %v5789_v1 }
0x19a7   :  { %5319 = vmatpush3.msra.mxu1 %v6457_v55 }
0x19a8   :  { %5320 = vmatprep.subr.mxu1 %v5789_v1 }
0x19a9   :  { %5321 = vmatpush3.msra.mxu1 %v6464_v56 }
0x19aa   :  { %5322 = vmatprep.subr.mxu1 %v5789_v1 }
0x19ab   :  { %5323 = vmatpush3.msra.mxu1 %v6471_v57 }
0x19ac   :  { %5324 = vmatprep.subr.mxu1 %v5789_v1 }
0x19ad   :  { %5325 = vmatpush3.msra.mxu1 %v6478_v58 }
0x19ae   :  { %5326 = vmatprep.subr.mxu1 %v5789_v1 }
0x19af   :  { %5327 = vmatpush3.msra.mxu1 %v6485_v59 }
0x19b0   :  { %5361 = vmatprep.subr.mxu1 %v5789_v1 }
0x1a60   :  { %v2580_v47 = vpop.f32.mrf.mxu1 }
0x1a61   :  { %v2581_v48 = vadd.f32 %v6492_v61, %v2580_v47 }
0x1a62   :  { %v5311_v49 = vpop.f32.mrf.mxu1 }
0x1a63   :  { %5700 = vtanh.f32 %v2581_v48 }
0x1a70   :  { %v5701_v50 = vpop.eup %5700 }
0x1a71   :  { %5329 = vmatmul.mubr.msk.f32.vlgmr.msra.gmra.mxu1 %vm132_vm2, %v5701_v50 }
0x1a72   :  { %5362 = vmatpush3.msra.mxu1 %v6358_v41  ;;  %5369 = vmatprep.mubr.msk.f32.mxu1 %vm5790_vm0, %v5789_v1 }
0x1a73   :  { %5363 = vmatprep.subr.mxu1 %v5789_v1 }
0x1a74   :  { %5364 = vmatpush3.msra.mxu1 %v6367_v42 }
0x1a75   :  { %5365 = vmatprep.subr.mxu1 %v5789_v1 }
0x1a76   :  { %5366 = vmatpush3.msra.mxu1 %v6374_v43 }
0x1a77   :  { %5367 = vmatprep.subr.mxu1 %v5789_v1 }
0x1a78   :  { %5368 = vmatpush3.msra.mxu1 %v6381_v44 }
0x1a79   :  { %5372 = vmatprep.subr.mxu1 %v5789_v1 }
0x1b31   :  { %v2654_v6 = vpop.f32.mrf.mxu1 }
0x1b32   :  { %v6622_v8 = vadd.f32 %v6509_v16, %v2654_v6 }
0x1b33   :  { %v5330_v9 = vpop.f32.mrf.mxu1 }
0x1b34   :  { %v2660_v10 = vmul.f32 %v2659_v7, %v6622_v8 }
0x1b36   :  { %v2661_v11 = vadd.f32 %v2660_v10, %v6582_v46 }
0x1b38   :  { %5340 = vmatmul.mubr.msk.f32.vlgmr.msra.gmra.mxu0 %vm55_vm1, %v2661_v11 }
0x1b39   :  { %5343 = vmatpush3.msra.mxu0 %v6434_v53  ;;  %5358 = vmatprep.mubr.msk.f32.mxu0 %vm5790_vm0, %v5789_v1 }
0x1b3a   :  { %5344 = vmatprep.subr.mxu0 %v5789_v1 }
0x1b3b   :  { %5345 = vmatpush3.msra.mxu0 %v6443_v19 }
0x1b3c   :  { %5346 = vmatprep.subr.mxu0 %v5789_v1 }
0x1b3d   :  { %5347 = vmatpush3.msra.mxu0 %v6450_v54 }
0x1b3e   :  { %5348 = vmatprep.subr.mxu0 %v5789_v1 }
0x1b3f   :  { %5349 = vmatpush3.msra.mxu0 %v6457_v55 }
0x1b40   :  { %5350 = vmatprep.subr.mxu0 %v5789_v1 }
0x1b41   :  { %5351 = vmatpush3.msra.mxu0 %v6464_v56 }
0x1b42   :  { %5352 = vmatprep.subr.mxu0 %v5789_v1 }
0x1b43   :  { %5353 = vmatpush3.msra.mxu0 %v6471_v57 }
0x1b44   :  { %5354 = vmatprep.subr.mxu0 %v5789_v1 }
0x1b45   :  { %5355 = vmatpush3.msra.mxu0 %v6478_v58 }
0x1b46   :  { %5356 = vmatprep.subr.mxu0 %v5789_v1 }
0x1b47   :  { %5357 = vmatpush3.msra.mxu0 %v6485_v59 }
0x1b48   :  { %5391 = vmatprep.subr.mxu0 %v5789_v1 }
0x1bf8   :  { %v2731_v12 = vpop.f32.mrf.mxu0 }
0x1bf9   :  { %v2732_v13 = vadd.f32 %v6492_v61, %v2731_v12 }
0x1bfa   :  { %v5341_v14 = vpop.f32.mrf.mxu0 }
0x1bfb   :  { %5702 = vtanh.f32 %v2732_v13 }
0x1c08   :  { %v5703_v52 = vpop.eup %5702 }
0x1c09   :  { %5359 = vmatmul.mubr.msk.f32.vlgmr.msra.gmra.mxu0 %vm132_vm2, %v5703_v52 }
0x1c0a   :  { %5392 = vmatpush3.msra.mxu0 %v6358_v41  ;;  %5399 = vmatprep.mubr.msk.f32.mxu0 %vm5790_vm0, %v5789_v1 }
0x1c0b   :  { %5393 = vmatprep.subr.mxu0 %v5789_v1 }
0x1c0c   :  { %5394 = vmatpush3.msra.mxu0 %v6367_v42 }
0x1c0d   :  { %5395 = vmatprep.subr.mxu0 %v5789_v1 }
0x1c0e   :  { %5396 = vmatpush3.msra.mxu0 %v6374_v43 }
0x1c0f   :  { %5397 = vmatprep.subr.mxu0 %v5789_v1 }
0x1c10   :  { %5398 = vmatpush3.msra.mxu0 %v6381_v44 }
0x1c11   :  { %5402 = vmatprep.subr.mxu0 %v5789_v1 }
0x1cc9   :  { %v2805_v60 = vpop.f32.mrf.mxu0 }
0x1cca   :  { %v2806_v62 = vadd.f32 %v6509_v16, %v2805_v60 }
0x1ccb   :  { %v5360_v63 = vpop.f32.mrf.mxu0 }
0x1ccc   :  { %v2809_v3 = vmul.f32 %v2806_v62, %v2659_v7  ;;  %v3111_v22 = vmul.f32 2.0, %v2806_v62 }
0x1cce   :  { %v2810_v15 = vadd.f32 %v2809_v3, %v6582_v46  ;;  %v3112_v27 = vadd.f32 %v3111_v22, %v6622_v8 }
0x1cd0   :  { %5370 = vmatmul.mubr.msk.f32.vlgmr.msra.gmra.mxu1 %vm55_vm1, %v2810_v15 }
0x1cd1   :  { %5373 = vmatpush3.msra.mxu1 %v6434_v53  ;;  %5388 = vmatprep.mubr.msk.f32.mxu1 %vm5790_vm0, %v5789_v1 }
0x1cd2   :  { %5374 = vmatprep.subr.mxu1 %v5789_v1 }
0x1cd3   :  { %5375 = vmatpush3.msra.mxu1 %v6443_v19 }
0x1cd4   :  { %5376 = vmatprep.subr.mxu1 %v5789_v1 }
0x1cd5   :  { %5377 = vmatpush3.msra.mxu1 %v6450_v54 }
0x1cd6   :  { %5378 = vmatprep.subr.mxu1 %v5789_v1 }
0x1cd7   :  { %5379 = vmatpush3.msra.mxu1 %v6457_v55 }
0x1cd8   :  { %5380 = vmatprep.subr.mxu1 %v5789_v1 }
0x1cd9   :  { %5381 = vmatpush3.msra.mxu1 %v6464_v56 }
0x1cda   :  { %5382 = vmatprep.subr.mxu1 %v5789_v1 }
0x1cdb   :  { %5383 = vmatpush3.msra.mxu1 %v6471_v57 }
0x1cdc   :  { %5384 = vmatprep.subr.mxu1 %v5789_v1 }
0x1cdd   :  { %5385 = vmatpush3.msra.mxu1 %v6478_v58 }
0x1cde   :  { %5386 = vmatprep.subr.mxu1 %v5789_v1 }
0x1cdf   :  { %5387 = vmatpush3.msra.mxu1 %v6485_v59 }
0x1ce0   :  { %5421 = vmatprep.subr.mxu1 %v5789_v1 }
0x1d90   :  { %v2880_v17 = vpop.f32.mrf.mxu1 }
0x1d91   :  { %v2881_v18 = vadd.f32 %v6492_v61, %v2880_v17 }
0x1d92   :  { %v5371_v20 = vpop.f32.mrf.mxu1 }
0x1d93   :  { %5704 = vtanh.f32 %v2881_v18 }
0x1da0   :  { %v5705_v21 = vpop.eup %5704 }
0x1da1   :  { %5389 = vmatmul.mubr.msk.f32.vlgmr.msra.gmra.mxu1 %vm132_vm2, %v5705_v21 }
0x1da2   :  { %5422 = vmatpush3.msra.mxu1 %v6358_v41  ;;  %5429 = vmatprep.mubr.msk.f32.mxu1 %vm5790_vm0, %v5789_v1 }
0x1da3   :  { %5423 = vmatprep.subr.mxu1 %v5789_v1 }
0x1da4   :  { %5424 = vmatpush3.msra.mxu1 %v6367_v42 }
0x1da5   :  { %5425 = vmatprep.subr.mxu1 %v5789_v1 }
0x1da6   :  { %5426 = vmatpush3.msra.mxu1 %v6374_v43 }
0x1da7   :  { %5427 = vmatprep.subr.mxu1 %v5789_v1 }
0x1da8   :  { %5428 = vmatpush3.msra.mxu1 %v6381_v44 }
0x1da9   :  { %5432 = vmatprep.subr.mxu1 %v5789_v1 }
0x1e61   :  { %v2954_v23 = vpop.f32.mrf.mxu1 }
0x1e62   :  { %v2955_v25 = vadd.f32 %v6509_v16, %v2954_v23 }
0x1e63   :  { %v5390_v26 = vpop.f32.mrf.mxu1 }
0x1e64   :  { %v2959_v28 = vmul.f32 %v2958_v24, %v2955_v25  ;;  %v3113_v29 = vmul.f32 2.0, %v2955_v25 }
0x1e66   :  { %v2960_v30 = vadd.f32 %v2959_v28, %v6582_v46  ;;  %v3114_v31 = vadd.f32 %v3113_v29, %v3112_v27 }
0x1e68   :  { %5400 = vmatmul.mubr.msk.f32.vlgmr.msra.gmra.mxu0 %vm55_vm1, %v2960_v30 }
0x1e69   :  { %5403 = vmatpush3.msra.mxu0 %v6434_v53  ;;  %5418 = vmatprep.mubr.msk.f32.mxu0 %vm5790_vm0, %v5789_v1 }
0x1e6a   :  { %5404 = vmatprep.subr.mxu0 %v5789_v1 }
0x1e6b   :  { %5405 = vmatpush3.msra.mxu0 %v6443_v19 }
0x1e6c   :  { %5406 = vmatprep.subr.mxu0 %v5789_v1 }
0x1e6d   :  { %5407 = vmatpush3.msra.mxu0 %v6450_v54 }
0x1e6e   :  { %5408 = vmatprep.subr.mxu0 %v5789_v1 }
0x1e6f   :  { %5409 = vmatpush3.msra.mxu0 %v6457_v55 }
0x1e70   :  { %5410 = vmatprep.subr.mxu0 %v5789_v1 }
0x1e71   :  { %5411 = vmatpush3.msra.mxu0 %v6464_v56 }
0x1e72   :  { %5412 = vmatprep.subr.mxu0 %v5789_v1 }
0x1e73   :  { %5413 = vmatpush3.msra.mxu0 %v6471_v57 }
0x1e74   :  { %5414 = vmatprep.subr.mxu0 %v5789_v1 }
0x1e75   :  { %5415 = vmatpush3.msra.mxu0 %v6478_v58 }
0x1e76   :  { %5416 = vmatprep.subr.mxu0 %v5789_v1 }
0x1e77   :  { %5417 = vmatpush3.msra.mxu0 %v6485_v59 }
0x1e78   :  { %5451 = vmatprep.subr.mxu0 %v5789_v1 }
0x1f28   :  { %v3030_v32 = vpop.f32.mrf.mxu0 }
0x1f29   :  { %v3031_v0 = vadd.f32 %v6492_v61, %v3030_v32 }
0x1f2a   :  { %v5401_v33 = vpop.f32.mrf.mxu0 }
0x1f2b   :  { %5706 = vtanh.f32 %v3031_v0 }
0x1f38   :  { %v5707_v34 = vpop.eup %5706 }
0x1f39   :  { %5419 = vmatmul.mubr.msk.f32.vlgmr.msra.gmra.mxu0 %vm132_vm2, %v5707_v34 }
0x1f3a   :  { %5452 = vmatpush3.msra.mxu0 %v6358_v41  ;;  %5459 = vmatprep.mubr.msk.f32.mxu0 %vm5790_vm0, %v5789_v1 }
0x1f3b   :  { %5453 = vmatprep.subr.mxu0 %v5789_v1 }
0x1f3c   :  { %5454 = vmatpush3.msra.mxu0 %v6367_v42 }
0x1f3d   :  { %5455 = vmatprep.subr.mxu0 %v5789_v1 }
0x1f3e   :  { %5456 = vmatpush3.msra.mxu0 %v6374_v43 }
0x1f3f   :  { %5457 = vmatprep.subr.mxu0 %v5789_v1 }
0x1f40   :  { %5458 = vmatpush3.msra.mxu0 %v6381_v44 }
0x1f41   :  { %5462 = vmatprep.subr.mxu0 %v5789_v1 }
0x1ff9   :  { %v3104_v35 = vpop.f32.mrf.mxu0 }
0x1ffa   :  { %v3105_v36 = vadd.f32 %v6509_v16, %v3104_v35 }
0x1ffb   :  { %v5420_v37 = vpop.f32.mrf.mxu0 }
0x1ffc   :  { %v3115_v38 = vadd.f32 %v3114_v31, %v3105_v36 }
0x1ffe   :  { %v3117_v4 = vmul.f32 %v3116_v2, %v3115_v38 }
0x2000   :  { %v6728_v5 = vadd.f32 %v3117_v4, %v6582_v46  ;;  %v5738_v4 = vld [vmem:[%s7024_s2 + $0x18] sm:$0xff] }
0x2002   :  { %3120 = vrot.lane.b32.xlu0 %v6728_v5, %s5791_s8  ;;  %5430 = vmatmul.mubr.msk.f32.vlgmr.msra.gmra.mxu1 %vm55_vm1, %v6728_v5  ;;  %s6768_s8 = sld [smem:[#allocation3 + $0x6]] }
0x2003   :  { %5433 = vmatpush3.msra.mxu1 %v6434_v53  ;;  %5448 = vmatprep.mubr.msk.f32.mxu1 %vm5790_vm0, %v5789_v1 }
0x2004   :  { %5434 = vmatprep.subr.mxu1 %v5789_v1 }
0x2005   :  { %5435 = vmatpush3.msra.mxu1 %v6443_v19 }
0x2006   :  { %1896 = vrot.lane.b32.xlu0 %v6388_v51, %s5793_s25  ;;  %5436 = vmatprep.subr.mxu1 %v5789_v1 }
0x2007   :  { %5437 = vmatpush3.msra.mxu1 %v6450_v54 }
0x2008   :  { %5438 = vmatprep.subr.mxu1 %v5789_v1  ;;  %s3271_s26 = smul.f32 0.5, %s6768_s8  ;;  %v3571_v21 = vstv %s6768_s8 }
0x2009   :  { %5439 = vmatpush3.msra.mxu1 %v6457_v55  ;;  %s3723_s27 = smul.f32 0.16666667, %s6768_s8 }
0x200a   :  { %5440 = vmatprep.subr.mxu1 %v5789_v1  ;;  %v3272_v49 = vstv %s3271_s26 }
0x200b   :  { %5441 = vmatpush3.msra.mxu1 %v6464_v56  ;;  %v3729_v33 = vstv %s3723_s27 }
0x200c   :  { %5442 = vmatprep.subr.mxu1 %v5789_v1 }
0x200d   :  { %5443 = vmatpush3.msra.mxu1 %v6471_v57 }
0x200e   :  { %5444 = vmatprep.subr.mxu1 %v5789_v1 }
0x200f   :  { %5445 = vmatpush3.msra.mxu1 %v6478_v58 }
0x2010   :  { %5446 = vmatprep.subr.mxu1 %v5789_v1 }
0x2011   :  { %5447 = vmatpush3.msra.mxu1 %v6485_v59 }
0x2012   :  { %5481 = vmatprep.subr.mxu1 %v5789_v1 }
0x2074   :  { %v3121_v51 = vpop.permute.xlu0 %3120 }
0x2075   :  { %3123 = vst.msk [vmem:[#allocation4 + $0x8] sm:$0xff] %vm671_vm3, %v3121_v51  ;;  %v5740_v51 = vld [vmem:[%s7024_s2 + $0x8] sm:$0xff] }
0x2078   :  { %v1897_v39 = vpop.permute.xlu0 %1896 }
0x2079   :  { %1900 = vst.msk [vmem:[#allocation4] sm:$0xff] %vm1899_vm5, %v1897_v39  ;;  %v5741_v39 = vld [vmem:[%s7024_s2] sm:$0xff] }
0x20c2   :  { %v3193_v40 = vpop.f32.mrf.mxu1 }
0x20c3   :  { %v3194_v45 = vadd.f32 %v6492_v61, %v3193_v40 }
0x20c4   :  { %v5431_v46 = vpop.f32.mrf.mxu1 }
0x20c5   :  { %5708 = vtanh.f32 %v3194_v45  ;;  %v3885_v45 = vstv %s3884_s12 }
0x20d2   :  { %v5709_v47 = vpop.eup %5708 }
0x20d3   :  { %5449 = vmatmul.mubr.msk.f32.vlgmr.msra.gmra.mxu1 %vm132_vm2, %v5709_v47 }
0x20d4   :  { %5482 = vmatpush3.msra.mxu1 %v6358_v41  ;;  %5489 = vmatprep.mubr.msk.f32.mxu1 %vm5790_vm0, %v5789_v1 }
0x20d5   :  { %5483 = vmatprep.subr.mxu1 %v5789_v1 }
0x20d6   :  { %5484 = vmatpush3.msra.mxu1 %v6367_v42 }
0x20d7   :  { %5485 = vmatprep.subr.mxu1 %v5789_v1 }
0x20d8   :  { %5486 = vmatpush3.msra.mxu1 %v6374_v43 }
0x20d9   :  { %5487 = vmatprep.subr.mxu1 %v5789_v1 }
0x20da   :  { %5488 = vmatpush3.msra.mxu1 %v6381_v44 }
0x20db   :  { %5492 = vmatprep.subr.mxu1 %v5789_v1 }
0x2193   :  { %v3267_v48 = vpop.f32.mrf.mxu1 }
0x2194   :  { %v6772_v50 = vadd.f32 %v6509_v16, %v3267_v48 }
0x2195   :  { %v5450_v6 = vpop.f32.mrf.mxu1 }
0x2196   :  { %v3273_v7 = vmul.f32 %v3272_v49, %v6772_v50  ;;  %v5744_v6 = vld [vmem:[%s7026_s4 + $0x28] sm:$0xff] }
0x2198   :  { %v3274_v8 = vadd.f32 %v3273_v7, %v6728_v5  ;;  %v5745_v7 = vld [vmem:[%s7026_s4 + $0x20] sm:$0xff] }
0x219a   :  { %5460 = vmatmul.mubr.msk.f32.vlgmr.msra.gmra.mxu0 %vm55_vm1, %v3274_v8  ;;  %v5746_v8 = vld [vmem:[%s7026_s4 + $0x18] sm:$0xff] }
0x219b   :  { %5463 = vmatpush3.msra.mxu0 %v6434_v53  ;;  %5478 = vmatprep.mubr.msk.f32.mxu0 %vm5790_vm0, %v5789_v1 }
0x219c   :  { %5464 = vmatprep.subr.mxu0 %v5789_v1 }
0x219d   :  { %5465 = vmatpush3.msra.mxu0 %v6443_v19 }
0x219e   :  { %5466 = vmatprep.subr.mxu0 %v5789_v1 }
0x219f   :  { %5467 = vmatpush3.msra.mxu0 %v6450_v54 }
0x21a0   :  { %5468 = vmatprep.subr.mxu0 %v5789_v1 }
0x21a1   :  { %5469 = vmatpush3.msra.mxu0 %v6457_v55 }
0x21a2   :  { %5470 = vmatprep.subr.mxu0 %v5789_v1 }
0x21a3   :  { %5471 = vmatpush3.msra.mxu0 %v6464_v56 }
0x21a4   :  { %5472 = vmatprep.subr.mxu0 %v5789_v1 }
0x21a5   :  { %5473 = vmatpush3.msra.mxu0 %v6471_v57 }
0x21a6   :  { %5474 = vmatprep.subr.mxu0 %v5789_v1 }
0x21a7   :  { %5475 = vmatpush3.msra.mxu0 %v6478_v58 }
0x21a8   :  { %5476 = vmatprep.subr.mxu0 %v5789_v1 }
0x21a9   :  { %5477 = vmatpush3.msra.mxu0 %v6485_v59 }
0x21aa   :  { %5511 = vmatprep.subr.mxu0 %v5789_v1 }
0x225a   :  { %v3344_v9 = vpop.f32.mrf.mxu0 }
0x225b   :  { %v3345_v10 = vadd.f32 %v6492_v61, %v3344_v9  ;;  %v5747_v9 = vld [vmem:[%s7026_s4 + $0x10] sm:$0xff] }
0x225c   :  { %v5461_v11 = vpop.f32.mrf.mxu0 }
0x225d   :  { %5710 = vtanh.f32 %v3345_v10  ;;  %v5748_v10 = vld [vmem:[%s7026_s4 + $0x8] sm:$0xff]  ;;  %v5749_v11 = vld [vmem:[%s7026_s4] sm:$0xff] }
0x226a   :  { %v5711_v12 = vpop.eup %5710 }
0x226b   :  { %5479 = vmatmul.mubr.msk.f32.vlgmr.msra.gmra.mxu0 %vm132_vm2, %v5711_v12 }
0x226c   :  { %5512 = vmatpush3.msra.mxu0 %v6358_v41  ;;  %5519 = vmatprep.mubr.msk.f32.mxu0 %vm5790_vm0, %v5789_v1 }
0x226d   :  { %5513 = vmatprep.subr.mxu0 %v5789_v1 }
0x226e   :  { %5514 = vmatpush3.msra.mxu0 %v6367_v42 }
0x226f   :  { %5515 = vmatprep.subr.mxu0 %v5789_v1 }
0x2270   :  { %5516 = vmatpush3.msra.mxu0 %v6374_v43 }
0x2271   :  { %5517 = vmatprep.subr.mxu0 %v5789_v1 }
0x2272   :  { %5518 = vmatpush3.msra.mxu0 %v6381_v44 }
0x2273   :  { %5522 = vmatprep.subr.mxu0 %v5789_v1 }
0x232b   :  { %v3418_v13 = vpop.f32.mrf.mxu0 }
0x232c   :  { %v3419_v14 = vadd.f32 %v6509_v16, %v3418_v13  ;;  %v5750_v13 = vld [vmem:[%s7025_s3] ss:$0 sm:$0xff]  ;;  %s4336_s3 = smul.f32 0.16666667, %s6923_s10 }
0x232d   :  { %v5480_v52 = vpop.f32.mrf.mxu0 }
0x232e   :  { %v3422_v60 = vmul.f32 %v3419_v14, %v3272_v49  ;;  %v3724_v18 = vmul.f32 2.0, %v3419_v14 }
0x2330   :  { %v3423_v62 = vadd.f32 %v3422_v60, %v6728_v5  ;;  %v3725_v24 = vadd.f32 %v3724_v18, %v6772_v50  ;;  %v5742_v50 = vld [vmem:[%s7026_s4 + $0x38] sm:$0xff] }
0x2332   :  { %5490 = vmatmul.mubr.msk.f32.vlgmr.msra.gmra.mxu1 %vm55_vm1, %v3423_v62 }
0x2333   :  { %5493 = vmatpush3.msra.mxu1 %v6434_v53  ;;  %5508 = vmatprep.mubr.msk.f32.mxu1 %vm5790_vm0, %v5789_v1 }
0x2334   :  { %5494 = vmatprep.subr.mxu1 %v5789_v1 }
0x2335   :  { %5495 = vmatpush3.msra.mxu1 %v6443_v19 }
0x2336   :  { %5496 = vmatprep.subr.mxu1 %v5789_v1 }
0x2337   :  { %5497 = vmatpush3.msra.mxu1 %v6450_v54 }
0x2338   :  { %5498 = vmatprep.subr.mxu1 %v5789_v1 }
0x2339   :  { %5499 = vmatpush3.msra.mxu1 %v6457_v55 }
0x233a   :  { %5500 = vmatprep.subr.mxu1 %v5789_v1 }
0x233b   :  { %5501 = vmatpush3.msra.mxu1 %v6464_v56 }
0x233c   :  { %5502 = vmatprep.subr.mxu1 %v5789_v1 }
0x233d   :  { %5503 = vmatpush3.msra.mxu1 %v6471_v57 }
0x233e   :  { %5504 = vmatprep.subr.mxu1 %v5789_v1 }
0x233f   :  { %5505 = vmatpush3.msra.mxu1 %v6478_v58 }
0x2340   :  { %5506 = vmatprep.subr.mxu1 %v5789_v1 }
0x2341   :  { %5507 = vmatpush3.msra.mxu1 %v6485_v59 }
0x2342   :  { %5541 = vmatprep.subr.mxu1 %v5789_v1 }
0x23f2   :  { %v3493_v63 = vpop.f32.mrf.mxu1 }
0x23f3   :  { %v3494_v3 = vadd.f32 %v6492_v61, %v3493_v63 }
0x23f4   :  { %v5491_v15 = vpop.f32.mrf.mxu1 }
0x23f5   :  { %5712 = vtanh.f32 %v3494_v3  ;;  %v4184_v3 = vstv %s6923_s10  ;;  %v5751_v15 = vld [vmem:[%s7027_s5] ss:$0 sm:$0xff] }
0x2402   :  { %v5713_v17 = vpop.eup %5712 }
0x2403   :  { %5509 = vmatmul.mubr.msk.f32.vlgmr.msra.gmra.mxu1 %vm132_vm2, %v5713_v17 }
0x2404   :  { %5542 = vmatpush3.msra.mxu1 %v6358_v41  ;;  %5549 = vmatprep.mubr.msk.f32.mxu1 %vm5790_vm0, %v5789_v1 }
0x2405   :  { %5543 = vmatprep.subr.mxu1 %v5789_v1 }
0x2406   :  { %5544 = vmatpush3.msra.mxu1 %v6367_v42 }
0x2407   :  { %5545 = vmatprep.subr.mxu1 %v5789_v1 }
0x2408   :  { %5546 = vmatpush3.msra.mxu1 %v6374_v43 }
0x2409   :  { %5547 = vmatprep.subr.mxu1 %v5789_v1 }
0x240a   :  { %5548 = vmatpush3.msra.mxu1 %v6381_v44 }
0x240b   :  { %5552 = vmatprep.subr.mxu1 %v5789_v1 }
0x24c3   :  { %v3567_v20 = vpop.f32.mrf.mxu1 }
0x24c4   :  { %v3568_v22 = vadd.f32 %v6509_v16, %v3567_v20 }
0x24c5   :  { %v5510_v23 = vpop.f32.mrf.mxu1 }
0x24c6   :  { %v3572_v25 = vmul.f32 %v3571_v21, %v3568_v22  ;;  %v3726_v26 = vmul.f32 2.0, %v3568_v22 }
0x24c8   :  { %v3573_v27 = vadd.f32 %v3572_v25, %v6728_v5  ;;  %v3727_v28 = vadd.f32 %v3726_v26, %v3725_v24 }
0x24ca   :  { %5520 = vmatmul.mubr.msk.f32.vlgmr.msra.gmra.mxu0 %vm55_vm1, %v3573_v27 }
0x24cb   :  { %5523 = vmatpush3.msra.mxu0 %v6434_v53  ;;  %5538 = vmatprep.mubr.msk.f32.mxu0 %vm5790_vm0, %v5789_v1 }
0x24cc   :  { %5524 = vmatprep.subr.mxu0 %v5789_v1 }
0x24cd   :  { %5525 = vmatpush3.msra.mxu0 %v6443_v19 }
0x24ce   :  { %5526 = vmatprep.subr.mxu0 %v5789_v1 }
0x24cf   :  { %5527 = vmatpush3.msra.mxu0 %v6450_v54 }
0x24d0   :  { %5528 = vmatprep.subr.mxu0 %v5789_v1 }
0x24d1   :  { %5529 = vmatpush3.msra.mxu0 %v6457_v55 }
0x24d2   :  { %5530 = vmatprep.subr.mxu0 %v5789_v1 }
0x24d3   :  { %5531 = vmatpush3.msra.mxu0 %v6464_v56 }
0x24d4   :  { %5532 = vmatprep.subr.mxu0 %v5789_v1 }
0x24d5   :  { %5533 = vmatpush3.msra.mxu0 %v6471_v57 }
0x24d6   :  { %5534 = vmatprep.subr.mxu0 %v5789_v1 }
0x24d7   :  { %5535 = vmatpush3.msra.mxu0 %v6478_v58 }
0x24d8   :  { %5536 = vmatprep.subr.mxu0 %v5789_v1 }
0x24d9   :  { %5537 = vmatpush3.msra.mxu0 %v6485_v59 }
0x24da   :  { %5571 = vmatprep.subr.mxu0 %v5789_v1 }
0x258a   :  { %v3643_v29 = vpop.f32.mrf.mxu0 }
0x258b   :  { %v3644_v30 = vadd.f32 %v6492_v61, %v3643_v29 }
0x258c   :  { %v5521_v31 = vpop.f32.mrf.mxu0 }
0x258d   :  { %5714 = vtanh.f32 %v3644_v30  ;;  %v4342_v31 = vstv %s4336_s3 }
0x259a   :  { %v5715_v32 = vpop.eup %5714 }
0x259b   :  { %5539 = vmatmul.mubr.msk.f32.vlgmr.msra.gmra.mxu0 %vm132_vm2, %v5715_v32 }
0x259c   :  { %5572 = vmatpush3.msra.mxu0 %v6358_v41  ;;  %5579 = vmatprep.mubr.msk.f32.mxu0 %vm5790_vm0, %v5789_v1 }
0x259d   :  { %5573 = vmatprep.subr.mxu0 %v5789_v1 }
0x259e   :  { %5574 = vmatpush3.msra.mxu0 %v6367_v42 }
0x259f   :  { %5575 = vmatprep.subr.mxu0 %v5789_v1 }
0x25a0   :  { %5576 = vmatpush3.msra.mxu0 %v6374_v43 }
0x25a1   :  { %5577 = vmatprep.subr.mxu0 %v5789_v1 }
0x25a2   :  { %5578 = vmatpush3.msra.mxu0 %v6381_v44 }
0x25a3   :  { %5582 = vmatprep.subr.mxu0 %v5789_v1 }
0x265b   :  { %v3717_v0 = vpop.f32.mrf.mxu0 }
0x265c   :  { %v3718_v41 = vadd.f32 %v6509_v16, %v3717_v0 }
0x265d   :  { %v5540_v34 = vpop.f32.mrf.mxu0 }
0x265e   :  { %v3728_v35 = vadd.f32 %v3727_v28, %v3718_v41 }
0x2660   :  { %v3730_v36 = vmul.f32 %v3729_v33, %v3728_v35 }
0x2662   :  { %v6878_v42 = vadd.f32 %v3730_v36, %v6728_v5  ;;  %v5739_v5 = vld [vmem:[%s7024_s2 + $0x10] sm:$0xff] }
0x2664   :  { %3733 = vrot.lane.b32.xlu1 %v6878_v42, %s5792_s11  ;;  %5550 = vmatmul.mubr.msk.f32.vlgmr.msra.gmra.mxu1 %vm55_vm1, %v6878_v42 }
0x2665   :  { %5553 = vmatpush3.msra.mxu1 %v6434_v53  ;;  %5568 = vmatprep.mubr.msk.f32.mxu1 %vm5790_vm0, %v5789_v1 }
0x2666   :  { %5554 = vmatprep.subr.mxu1 %v5789_v1 }
0x2667   :  { %5555 = vmatpush3.msra.mxu1 %v6443_v19 }
0x2668   :  { %5556 = vmatprep.subr.mxu1 %v5789_v1 }
0x2669   :  { %5557 = vmatpush3.msra.mxu1 %v6450_v54 }
0x266a   :  { %5558 = vmatprep.subr.mxu1 %v5789_v1 }
0x266b   :  { %5559 = vmatpush3.msra.mxu1 %v6457_v55 }
0x266c   :  { %5560 = vmatprep.subr.mxu1 %v5789_v1 }
0x266d   :  { %5561 = vmatpush3.msra.mxu1 %v6464_v56 }
0x266e   :  { %5562 = vmatprep.subr.mxu1 %v5789_v1 }
0x266f   :  { %5563 = vmatpush3.msra.mxu1 %v6471_v57 }
0x2670   :  { %5564 = vmatprep.subr.mxu1 %v5789_v1 }
0x2671   :  { %5565 = vmatpush3.msra.mxu1 %v6478_v58 }
0x2672   :  { %5566 = vmatprep.subr.mxu1 %v5789_v1 }
0x2673   :  { %5567 = vmatpush3.msra.mxu1 %v6485_v59 }
0x2674   :  { %5601 = vmatprep.subr.mxu1 %v5789_v1 }
0x26d6   :  { %v3734_v43 = vpop.permute.xlu1 %3733 }
0x26d7   :  { %3736 = vst.msk [vmem:[#allocation4 + $0x8] sm:$0xff] %vm1285_vm4, %v3734_v43 }
0x2724   :  { %v3806_v44 = vpop.f32.mrf.mxu1 }
0x2725   :  { %v3807_v2 = vadd.f32 %v6492_v61, %v3806_v44 }
0x2726   :  { %v5551_v37 = vpop.f32.mrf.mxu1 }
0x2727   :  { %5716 = vtanh.f32 %v3807_v2 }
0x2734   :  { %v5717_v38 = vpop.eup %5716 }
0x2735   :  { %5569 = vmatmul.mubr.msk.f32.vlgmr.msra.gmra.mxu1 %vm132_vm2, %v5717_v38 }
0x2736   :  { %5602 = vmatpush3.msra.mxu1 %v5738_v4  ;;  %5609 = vmatprep.mubr.msk.f32.mxu1 %vm5790_vm0, %v5789_v1 }
0x2737   :  { %5603 = vmatprep.subr.mxu1 %v5789_v1 }
0x2738   :  { %5604 = vmatpush3.msra.mxu1 %v5739_v5 }
0x2739   :  { %5605 = vmatprep.subr.mxu1 %v5789_v1 }
0x273a   :  { %5606 = vmatpush3.msra.mxu1 %v5740_v51 }
0x273b   :  { %5607 = vmatprep.subr.mxu1 %v5789_v1 }
0x273c   :  { %5608 = vmatpush3.msra.mxu1 %v5741_v39 }
0x273d   :  { %5612 = vmatprep.subr.mxu1 %v5789_v1 }
0x27f5   :  { %v3880_v40 = vpop.f32.mrf.mxu1 }
0x27f6   :  { %v6927_v46 = vadd.f32 %v6509_v16, %v3880_v40 }
0x27f7   :  { %v5570_v47 = vpop.f32.mrf.mxu1 }
0x27f8   :  { %v3886_v48 = vmul.f32 %v3885_v45, %v6927_v46 }
0x27fa   :  { %v3887_v49 = vadd.f32 %v3886_v48, %v6878_v42 }
0x27fc   :  { %5580 = vmatmul.mubr.msk.f32.vlgmr.msra.gmra.mxu0 %vm55_vm1, %v3887_v49 }
0x27fd   :  { %5583 = vmatpush3.msra.mxu0 %v6434_v53  ;;  %5598 = vmatprep.mubr.msk.f32.mxu0 %vm5790_vm0, %v5789_v1 }
0x27fe   :  { %5584 = vmatprep.subr.mxu0 %v5789_v1 }
0x27ff   :  { %5585 = vmatpush3.msra.mxu0 %v6443_v19 }
0x2800   :  { %5586 = vmatprep.subr.mxu0 %v5789_v1 }
0x2801   :  { %5587 = vmatpush3.msra.mxu0 %v6450_v54 }
0x2802   :  { %5588 = vmatprep.subr.mxu0 %v5789_v1 }
0x2803   :  { %5589 = vmatpush3.msra.mxu0 %v6457_v55 }
0x2804   :  { %5590 = vmatprep.subr.mxu0 %v5789_v1 }
0x2805   :  { %5591 = vmatpush3.msra.mxu0 %v6464_v56 }
0x2806   :  { %5592 = vmatprep.subr.mxu0 %v5789_v1 }
0x2807   :  { %5593 = vmatpush3.msra.mxu0 %v6471_v57 }
0x2808   :  { %5594 = vmatprep.subr.mxu0 %v5789_v1 }
0x2809   :  { %5595 = vmatpush3.msra.mxu0 %v6478_v58 }
0x280a   :  { %5596 = vmatprep.subr.mxu0 %v5789_v1 }
0x280b   :  { %5597 = vmatpush3.msra.mxu0 %v6485_v59 }
0x280c   :  { %5631 = vmatprep.subr.mxu0 %v5789_v1 }
0x28bc   :  { %v3957_v53 = vpop.f32.mrf.mxu0 }
0x28bd   :  { %v3958_v19 = vadd.f32 %v6492_v61, %v3957_v53 }
0x28be   :  { %v5581_v54 = vpop.f32.mrf.mxu0 }
0x28bf   :  { %5718 = vtanh.f32 %v3958_v19 }
0x28cc   :  { %v5719_v55 = vpop.eup %5718 }
0x28cd   :  { %5599 = vmatmul.mubr.msk.f32.vlgmr.msra.gmra.mxu0 %vm132_vm2, %v5719_v55 }
0x28ce   :  { %5632 = vmatpush3.msra.mxu0 %v5738_v4  ;;  %5639 = vmatprep.mubr.msk.f32.mxu0 %vm5790_vm0, %v5789_v1 }
0x28cf   :  { %5633 = vmatprep.subr.mxu0 %v5789_v1 }
0x28d0   :  { %5634 = vmatpush3.msra.mxu0 %v5739_v5 }
0x28d1   :  { %5635 = vmatprep.subr.mxu0 %v5789_v1 }
0x28d2   :  { %5636 = vmatpush3.msra.mxu0 %v5740_v51 }
0x28d3   :  { %5637 = vmatprep.subr.mxu0 %v5789_v1 }
0x28d4   :  { %5638 = vmatpush3.msra.mxu0 %v5741_v39 }
0x28d5   :  { %5642 = vmatprep.subr.mxu0 %v5789_v1 }
0x298d   :  { %v4031_v56 = vpop.f32.mrf.mxu0 }
0x298e   :  { %v4032_v57 = vadd.f32 %v6509_v16, %v4031_v56  ;;  %v5743_v16 = vld [vmem:[%s7026_s4 + $0x30] sm:$0xff]  ;;  %s5794_s4 = smov [#allocation4]  }
0x298f   :  { %v5600_v58 = vpop.f32.mrf.mxu0  ;;  %s4356_s5 = sshll.u32 %s5794_s4, 4  ;;  %s4357_s5 = int_to_ptr.vmem [resolvable:$true] %s4356_s5 }
0x2990   :  { %v4035_v59 = vmul.f32 %v4032_v57, %v3885_v45  ;;  %v4337_v62 = vmul.f32 2.0, %v4032_v57  ;;  %s5764_s30 = scalar_lea.vmem %s4357_s5, 256  ;;  %p5769_p6 = scmp.lt.s32.totalorder %s4357_s5, %s4357_s5 }
0x2991   :  { %p5765_p5 = scmp.ne.s32.totalorder %s4357_s5, %s5764_s30  ;;  %p5770_p7 = scmp.lt.s32.totalorder %s5764_s30, %s5764_s30 }
0x2992   :  { %v4036_v61 = vadd.f32 %v4035_v59, %v6878_v42  ;;  %v4338_v20 = vadd.f32 %v4337_v62, %v6927_v46 }
0x2993   :  { %p5771_p8 = por %p5770_p7, %p5769_p6 }
0x2994   :  { %5610 = vmatmul.mubr.msk.f32.vlgmr.msra.gmra.mxu1 %vm55_vm1, %v4036_v61 }
0x2995   :  { %5613 = vmatpush3.msra.mxu1 %v5742_v50  ;;  %5628 = vmatprep.mubr.msk.f32.mxu1 %vm5790_vm0, %v5789_v1  ;;  %p5772_p9 = pnand %p5771_p8, %p5765_p5 }
0x2996   :  { %5614 = vmatprep.subr.mxu1 %v5789_v1 }
0x2997   :  { %5615 = vmatpush3.msra.mxu1 %v5743_v16 }
0x2998   :  { %5616 = vmatprep.subr.mxu1 %v5789_v1 }
0x2999   :  { %5617 = vmatpush3.msra.mxu1 %v5744_v6 }
0x299a   :  { %5618 = vmatprep.subr.mxu1 %v5789_v1 }
0x299b   :  { %5619 = vmatpush3.msra.mxu1 %v5745_v7 }
0x299c   :  { %5620 = vmatprep.subr.mxu1 %v5789_v1 }
0x299d   :  { %5621 = vmatpush3.msra.mxu1 %v5746_v8 }
0x299e   :  { %5622 = vmatprep.subr.mxu1 %v5789_v1 }
0x299f   :  { %5623 = vmatpush3.msra.mxu1 %v5747_v9 }
0x29a0   :  { %5624 = vmatprep.subr.mxu1 %v5789_v1 }
0x29a1   :  { %5625 = vmatpush3.msra.mxu1 %v5748_v10 }
0x29a2   :  { %5626 = vmatprep.subr.mxu1 %v5789_v1 }
0x29a3   :  { %5627 = vmatpush3.msra.mxu1 %v5749_v11 }
0x2a54   :  { %v4106_v12 = vpop.f32.mrf.mxu1 }
0x2a55   :  { %v4107_v14 = vadd.f32 %v5750_v13, %v4106_v12 }
0x2a56   :  { %v5611_v52 = vpop.f32.mrf.mxu1 }
0x2a57   :  { %5720 = vtanh.f32 %v4107_v14 }
0x2a64   :  { %v5721_v60 = vpop.eup %5720 }
0x2a65   :  { %5629 = vmatmul.mubr.msk.f32.vlgmr.msra.gmra.mxu1 %vm132_vm2, %v5721_v60 }
0x2b25   :  { %v4180_v63 = vpop.f32.mrf.mxu1 }
0x2b26   :  { %v4181_v17 = vadd.f32 %v5751_v15, %v4180_v63 }
0x2b27   :  { %v5630_v18 = vpop.f32.mrf.mxu1 }
0x2b28   :  { %v4185_v21 = vmul.f32 %v4184_v3, %v4181_v17  ;;  %v4339_v22 = vmul.f32 2.0, %v4181_v17 }
0x2b2a   :  { %v4186_v23 = vadd.f32 %v4185_v21, %v6878_v42  ;;  %v4340_v24 = vadd.f32 %v4339_v22, %v4338_v20 }
0x2b2c   :  { %5640 = vmatmul.mubr.msk.f32.vlgmr.msra.gmra.mxu0 %vm55_vm1, %v4186_v23 }
0x2b2d   :  { %5643 = vmatpush3.msra.mxu0 %v5742_v50  ;;  %5658 = vmatprep.mubr.msk.f32.mxu0 %vm5790_vm0, %v5789_v1 }
0x2b2e   :  { %5644 = vmatprep.subr.mxu0 %v5789_v1 }
0x2b2f   :  { %5645 = vmatpush3.msra.mxu0 %v5743_v16 }
0x2b30   :  { %5646 = vmatprep.subr.mxu0 %v5789_v1 }
0x2b31   :  { %5647 = vmatpush3.msra.mxu0 %v5744_v6 }
0x2b32   :  { %5648 = vmatprep.subr.mxu0 %v5789_v1 }
0x2b33   :  { %5649 = vmatpush3.msra.mxu0 %v5745_v7 }
0x2b34   :  { %5650 = vmatprep.subr.mxu0 %v5789_v1 }
0x2b35   :  { %5651 = vmatpush3.msra.mxu0 %v5746_v8 }
0x2b36   :  { %5652 = vmatprep.subr.mxu0 %v5789_v1 }
0x2b37   :  { %5653 = vmatpush3.msra.mxu0 %v5747_v9 }
0x2b38   :  { %5654 = vmatprep.subr.mxu0 %v5789_v1 }
0x2b39   :  { %5655 = vmatpush3.msra.mxu0 %v5748_v10 }
0x2b3a   :  { %5656 = vmatprep.subr.mxu0 %v5789_v1 }
0x2b3b   :  { %5657 = vmatpush3.msra.mxu0 %v5749_v11 }
0x2bec   :  { %v4256_v25 = vpop.f32.mrf.mxu0 }
0x2bed   :  { %v4257_v26 = vadd.f32 %v5750_v13, %v4256_v25 }
0x2bee   :  { %v5641_v27 = vpop.f32.mrf.mxu0 }
0x2bef   :  { %5722 = vtanh.f32 %v4257_v26 }
0x2bfc   :  { %v5723_v28 = vpop.eup %5722 }
0x2bfd   :  { %5659 = vmatmul.mubr.msk.f32.vlgmr.msra.gmra.mxu0 %vm132_vm2, %v5723_v28 }
0x2cbd   :  { %v4330_v29 = vpop.f32.mrf.mxu0 }
0x2cbe   :  { %v4331_v30 = vadd.f32 %v5751_v15, %v4330_v29 }
0x2cbf   :  { %v5660_v32 = vpop.f32.mrf.mxu0 }
0x2cc0   :  { %v4341_v0 = vadd.f32 %v4340_v24, %v4331_v30 }
0x2cc2   :  { %v4343_v41 = vmul.f32 %v4342_v31, %v4341_v0 }
0x2cc4   :  { %v4344_v33 = vadd.f32 %v4343_v41, %v6878_v42 }
0x2cc6   :  { %4346 = vrot.lane.b32.xlu1 %v4344_v33, %s5793_s25 }
0x2d38   :  { %v4347_v1 = vpop.permute.xlu1 %4346 }
0x2d39   :  { %4349 = vst.msk [vmem:[#allocation4 + $0x8] sm:$0xff] %vm1899_vm5, %v4347_v1 }
0x2d3a   :  { %5775 = shalt.err (!%p5772_p9)
}
0x2d3b   :  { %4359 = dma.vmem_to_hbm [thread:$0]  %s4357_s5, 256, %s7028_s6, [#allocation5]  }
0x2d3c   :  { %5786 = dma.done.wait [#allocation5], 256  }
0x2d3d   :  { %5787 = vsyncadd [#allocation5], 4294967040 }
0x2d3e   :  { %4363 = vsyncpa [#allocation5], 1 }

</bundles_post_ra>
